<compile_context>
chip_gen: v5e
topology: v5e:2x2
jax: 0.10.0
libtpu: 0.0.40
codegen_flags: <defaults>
</compile_context>

<pallas_src>
from functools import partial

import jax
import jax.numpy as jnp
from jax import lax
from jax.experimental import pallas as pl
from jax.experimental.pallas import tpu as pltpu


# --------------------------- fused Down kernel ------------------------------

def _conv3x3_from_halo(halo_ref, w_ref, c):
    """3x3 'SAME' conv read straight from the zero-bordered halo scratch.

    halo_ref: (G, H2+2, W2+2, Cmax) VMEM scratch whose interior
    [:, 1:-1, 1:-1, :c] holds the activation and whose border is zero.
    w_ref: (9, c, n) weights with the BN scale already folded in.
    Returns an f32 (G*H2*W2, n) value.
    """
    g, hp2, wp2, _ = halo_ref.shape
    h2, w2 = hp2 - 2, wp2 - 2
    m = g * h2 * w2
    n = w_ref.shape[-1]

    def tap(dy, dx):
        return halo_ref[:, dy:dy + h2, dx:dx + w2, :c].reshape(m, c)

    if c < 64:
        # Tiny channel counts: fuse K across the 9 taps (K = 9*c) so a single
        # matmul keeps the MXU fed; the slab is small at these widths.
        patches = jnp.concatenate(
            [tap(dy, dx) for dy in range(3) for dx in range(3)], axis=-1)
        return jnp.dot(patches, w_ref[...].reshape(9 * c, n),
                       preferred_element_type=jnp.float32)

    # Real widths: 9 accumulating matmuls, no im2col slab.
    acc = jnp.zeros((m, n), jnp.float32)
    for dy in range(3):
        for dx in range(3):
            acc += jnp.dot(tap(dy, dx), w_ref[3 * dy + dx],
                           preferred_element_type=jnp.float32)
    return acc


def _down_fused_kernel(x_ref, w1_ref, b1_ref, w2_ref, b2_ref, o_ref, halo_ref):
    G, Hp2, Wp2, Cmax = halo_ref.shape
    H2, W2 = Hp2 - 2, Wp2 - 2
    Cin = x_ref.shape[3] // 2
    Cmid = w2_ref.shape[1]
    dt = halo_ref.dtype

    # Zero the 1-pixel halo border (cheap perimeter-only stores, every step:
    # a pid==0-only init would miss the second TensorCore's private scratch
    # under megacore sharding of the "parallel" grid axis).
    zrow = jnp.zeros((G, 1, Wp2, Cmax), dt)
    zcol = jnp.zeros((G, Hp2, 1, Cmax), dt)
    halo_ref[:, 0:1, :, :] = zrow
    halo_ref[:, H2 + 1:H2 + 2, :, :] = zrow
    halo_ref[:, :, 0:1, :] = zcol
    halo_ref[:, :, W2 + 1:W2 + 2, :] = zcol

    # ---- MaxPool2d(2): wrapper hands us a free (G*H2, 2, W2, 2*Cin) window
    #      view; the pooled activation never leaves VMEM. --------------------
    xt = x_ref[...]
    xr = jnp.maximum(xt[:, 0], xt[:, 1])                 # max over window rows
    p = jnp.maximum(xr[:, :, :Cin], xr[:, :, Cin:])      # max over window cols
    # Cast before the tap reads (9x cheaper than casting patch slabs) and park
    # the pooled activation inside the zero-bordered halo scratch.
    halo_ref[:, 1:H2 + 1, 1:W2 + 1, :Cin] = p.reshape(G, H2, W2, Cin).astype(dt)

    # ---- conv1 + shortcut share the pooled input -> one fused weight along
    #      Cout; BN scale is folded into w, only the bias is added here. -----
    y = _conv3x3_from_halo(halo_ref, w1_ref, Cin) + b1_ref[...]
    h1 = jnp.maximum(y[:, :Cmid], 0.0)                   # conv1 branch + ReLU
    res = y[:, Cmid:]                                    # shortcut branch

    halo_ref[:, 1:H2 + 1, 1:W2 + 1, :Cmid] = h1.reshape(G, H2, W2, Cmid).astype(dt)

    # ---- conv2 + residual add + final ReLU (lane-dense padded-Cout store) --
    y2 = _conv3x3_from_halo(halo_ref, w2_ref, Cmid) + b2_ref[...]
    o_ref[...] = jnp.maximum(y2 + res, 0.0).astype(o_ref.dtype)


# ------------------------------- wrapper -------------------------------------

def _pad_last(a, n):
    pad = n - a.shape[-1]
    if pad <= 0:
        return a
    return jnp.pad(a, [(0, 0)] * (a.ndim - 1) + [(0, pad)])


@partial(jax.jit, static_argnames=("use_bf16",))
def down_forward(x_nchw, params, use_bf16=False):
    # TODO(synk): in a full NHWC UNet these NCHW<->NHWC transposes (extra HBM
    # passes over the activation) disappear; kept only to honor the PyTorch
    # layout contract of this single module.
    x = jnp.transpose(x_nchw, (0, 2, 3, 1))              # NCHW -> NHWC
    N, H, W, Cin = x.shape
    H2, W2 = H // 2, W // 2
    Cmid = params["w1"].shape[-1]
    Cout = params["w2"].shape[-1]
    Cmax = max(Cin, Cmid)

    # Lane/MXU alignment: pad shortcut / conv2 output channels to a multiple
    # of 128 so the final matmul N dim is aligned and the output store is wide
    # and unmasked (no-op at real UNet widths).
    Cout_p = Cout if Cout % 128 == 0 else ((Cout + 127) // 128) * 128
    Ntot = Cmid + Cout_p

    # Images per grid step: keep the matmul M dim >= ~256 at small spatial
    # sizes to amortize per-step pipeline overhead.
    # TODO(synk): on v7x (2 TCs) add a spatial-strip "parallel" axis when N is
    # small/odd so the second core is not left idle.
    cap = max(1, 256 // (H2 * W2))
    G = 1
    for d in range(1, min(cap, N) + 1):
        if N % d == 0:
            G = d
    M = G * H2 * W2

    # Free reshape-view exposing the 2x2 pooling windows to the kernel:
    # element [n*H2 + h2, a, w2, b*Cin + c] == x[n, 2*h2 + a, 2*w2 + b, c].
    xv = x.reshape(N * H2, 2, W2, 2 * Cin)

    # Fold the BN scale into the conv weights (exact, in f32), pad to Cout_p,
    # concatenate conv1 + shortcut along Cout, then cast (bf16 = v6e/v7x MXU
    # fast path; keep f32 on v5e).
    wdt = jnp.bfloat16 if use_bf16 else jnp.float32
    w1 = params["w1"] * params["s1"].reshape(1, 1, Cmid)
    ws = _pad_last(params["ws"] * params["ss"].reshape(1, 1, Cout), Cout_p)
    w1cat = jnp.concatenate([w1, ws], axis=-1).astype(wdt)       # (9, Cin, Ntot)
    b1cat = jnp.concatenate([params["b1"], _pad_last(params["bs"], Cout_p)],
                            axis=-1)                             # (1, Ntot) f32
    w2 = _pad_last(params["w2"] * params["s2"].reshape(1, 1, Cout),
                   Cout_p).astype(wdt)                           # (9, Cmid, Cout_p)
    b2 = _pad_last(params["b2"], Cout_p)                         # (1, Cout_p) f32

    # Explicit VMEM budget (double-buffered tiles, resident weights, halo
    # scratch, matmul intermediates) with headroom.
    # TODO(synk): pipeline_mode=pl.Buffered(1) on the constant-index weight
    # specs would halve resident-weight VMEM on v7x's 64 MiB.
    bpe = 2 if use_bf16 else 4
    in_tile = G * H2 * 2 * W2 * 2 * Cin * 4
    w_bytes = (w1cat.size + w2.size) * bpe + (b1cat.size + b2.size) * 4
    halo_bytes = G * (H2 + 2) * (W2 + 2) * Cmax * bpe
    slab = (M * (9 * Cin if Cin < 64 else Cin) * bpe
            + M * (9 * Cmid if Cmid < 64 else Cmid) * bpe)
    inter = M * (Ntot + Cmid + 3 * Cout_p) * 4
    out_tile = M * Cout_p * 4
    need = 2 * in_tile + 2 * w_bytes + halo_bytes + slab + inter + 2 * out_tile
    vmem_limit = int(min(64 << 20, max(32 << 20, 1.5 * need + (2 << 20))))

    out_flat = pl.pallas_call(
        _down_fused_kernel,
        grid=(N // G,),
        in_specs=[
            pl.BlockSpec((G * H2, 2, W2, 2 * Cin), lambda n: (n, 0, 0, 0)),
            pl.BlockSpec((9, Cin, Ntot), lambda n: (0, 0, 0)),
            pl.BlockSpec((1, Ntot), lambda n: (0, 0)),
            pl.BlockSpec((9, Cmid, Cout_p), lambda n: (0, 0, 0)),
            pl.BlockSpec((1, Cout_p), lambda n: (0, 0)),
        ],
        out_specs=pl.BlockSpec((M, Cout_p), lambda n: (n, 0)),
        out_shape=jax.ShapeDtypeStruct((N * H2 * W2, Cout_p), jnp.float32),
        scratch_shapes=[pltpu.VMEM((G, H2 + 2, W2 + 2, Cmax), wdt)],
        compiler_params=pltpu.CompilerParams(
            dimension_semantics=("parallel",),
            vmem_limit_bytes=vmem_limit),
    )(xv, w1cat, b1cat, w2, b2)

    out = out_flat[:, :Cout].reshape(N, H2, W2, Cout)
    return jnp.transpose(out, (0, 3, 1, 2))              # NHWC -> NCHW


# ----------------------------- parameters ------------------------------------

def _fold_bn(gamma, beta, mean, var, conv_bias, eps=1e-5):
    scale = gamma / jnp.sqrt(var + eps)
    bias = beta + (conv_bias - mean) * scale
    c = scale.shape[0]
    return scale.reshape(1, c), bias.reshape(1, c)


def init_down_params(key, in_channels, out_channels):
    mid = out_channels  # BasicBlock: mid_channels defaults to out_channels
    keys = jax.random.split(key, 18)

    def conv_w(k, cin, cout):
        w = jax.random.normal(k, (cout, cin, 3, 3), jnp.float32)
        w = w / jnp.sqrt(9.0 * cin)
        # (Cout, Cin, 3, 3) -> (3, 3, Cin, Cout) -> (9, Cin, Cout)
        return jnp.transpose(w, (2, 3, 1, 0)).reshape(9, cin, cout)

    def bn_stats(ks, c):
        gamma = 1.0 + 0.1 * jax.random.normal(ks[0], (c,), jnp.float32)
        beta = 0.1 * jax.random.normal(ks[1], (c,), jnp.float32)
        mean = 0.1 * jax.random.normal(ks[2], (c,), jnp.float32)
        var = jnp.abs(jax.random.normal(ks[3], (c,), jnp.float32)) + 0.5
        return gamma, beta, mean, var

    p = {}
    # conv1[0] + conv1[1]  (in -> mid)
    p["w1"] = conv_w(keys[0], in_channels, mid)
    cb1 = 0.1 * jax.random.normal(keys[1], (mid,), jnp.float32)
    p["s1"], p["b1"] = _fold_bn(*bn_stats(keys[2:6], mid), cb1)
    # conv1[3] + conv1[4]  (mid -> out)
    p["w2"] = conv_w(keys[6], mid, out_channels)
    cb2 = 0.1 * jax.random.normal(keys[7], (out_channels,), jnp.float32)
    p["s2"], p["b2"] = _fold_bn(*bn_stats(keys[8:12], out_channels), cb2)
    # shortcut conv + BN  (in -> out)
    p["ws"] = conv_w(keys[12], in_channels, out_channels)
    cbs = 0.1 * jax.random.normal(keys[13], (out_channels,), jnp.float32)
    p["ss"], p["bs"] = _fold_bn(*bn_stats(keys[14:18], out_channels), cbs)
    return p


# ----------------------------- pure-JAX reference -----------------------------

def _ref_conv_bn(x, w9, scale, bias):
    cin, cout = w9.shape[1], w9.shape[2]
    w = w9.reshape(3, 3, cin, cout)
    y = lax.conv_general_dilated(x, w, (1, 1), "SAME",
                                 dimension_numbers=("NHWC", "HWIO", "NHWC"))
    return y * scale.reshape(1, 1, 1, cout) + bias.reshape(1, 1, 1, cout)


def down_forward_ref(x_nchw, params):
    x = jnp.transpose(x_nchw, (0, 2, 3, 1))
    p = lax.reduce_window(x, -jnp.inf, lax.max, (1, 2, 2, 1), (1, 2, 2, 1),
                          "VALID")
    h1 = jnp.maximum(_ref_conv_bn(p, params["w1"], params["s1"], params["b1"]), 0.0)
    res = _ref_conv_bn(p, params["ws"], params["ss"], params["bs"])
    out = jnp.maximum(_ref_conv_bn(h1, params["w2"], params["s2"], params["b2"]) + res, 0.0)
    return jnp.transpose(out, (0, 3, 1, 2))


if __name__ == "__main__":
    key = jax.random.PRNGKey(0)
    kx, kp, kx2, kp2 = jax.random.split(key, 4)

    # --- config 1: spec's small demo shape (tiny channels -> fused-K slab
    #     path, Cout padded to 128 for a lane-dense store) --------------------
    N, Cin, H, W, Cout = 2, 4, 16, 16, 8
    x = jax.random.normal(kx, (N, Cin, H, W), jnp.float32)
    params = init_down_params(kp, Cin, Cout)
    ref = jax.block_until_ready(down_forward_ref(x, params))

    out = jax.block_until_ready(down_forward(x, params))
    assert out.shape == (N, Cout, H // 2, W // 2), out.shape
    err = float(jnp.max(jnp.abs(out - ref)))
    assert jnp.allclose(out, ref, rtol=1e-3, atol=2e-3), err

    # bf16 MXU-input path (v6e/v7x), f32 accumulation -> relaxed tolerance.
    out_bf16 = jax.block_until_ready(down_forward(x, params, use_bf16=True))
    err_bf16 = float(jnp.max(jnp.abs(out_bf16 - ref)))
    assert jnp.allclose(out_bf16, ref, rtol=1e-1, atol=1e-1), err_bf16

    # --- config 2: wider channels -> per-tap accumulating-matmul path and the
    #     no-padding branch (Cout % 128 == 0); exercises the real-width code --
    N2, Cin2, Hs, Ws, Cout2 = 2, 64, 8, 8, 128
    x2 = jax.random.normal(kx2, (N2, Cin2, Hs, Ws), jnp.float32)
    params2 = init_down_params(kp2, Cin2, Cout2)
    ref2 = jax.block_until_ready(down_forward_ref(x2, params2))
    out2 = jax.block_until_ready(down_forward(x2, params2))
    assert out2.shape == (N2, Cout2, Hs // 2, Ws // 2), out2.shape
    err2 = float(jnp.max(jnp.abs(out2 - ref2)))
    assert jnp.allclose(out2, ref2, rtol=1e-3, atol=2e-3), err2

    print("KERNEL_OK")
</pallas_src>

<mosaic_0001>
module attributes {stable_mosaic.version = 11 : i64} {
  func.func @_down_fused_kernel(%arg0: i32, %arg1: memref<16x2x8x8xf32, #tpu.memory_space<vmem>>, %arg2: memref<9x4x136xf32, #tpu.memory_space<vmem>>, %arg3: memref<1x136xf32, #tpu.memory_space<vmem>>, %arg4: memref<9x8x128xf32, #tpu.memory_space<vmem>>, %arg5: memref<1x128xf32, #tpu.memory_space<vmem>>, %arg6: memref<128x128xf32, #tpu.memory_space<vmem>>, %arg7: memref<2x10x10x8xf32, #tpu.memory_space<vmem>>) attributes {dimension_semantics = [#tpu.dimension_semantics<parallel>], iteration_bounds = array<i64: 1>, scalar_prefetch = 0 : i64, scratch_operands = 1 : i64, tpu.core_type = #tpu.core_type<tc>, window_params = [{transform_indices = @transform_0, window_bounds = array<i64: 16, 2, 8, 8>}, {pipeline_mode = #tpu.pipeline_mode<synchronous>, transform_indices = @transform_1, window_bounds = array<i64: 9, 4, 136>}, {pipeline_mode = #tpu.pipeline_mode<synchronous>, transform_indices = @transform_2, window_bounds = array<i64: 1, 136>}, {pipeline_mode = #tpu.pipeline_mode<synchronous>, transform_indices = @transform_3, window_bounds = array<i64: 9, 8, 128>}, {pipeline_mode = #tpu.pipeline_mode<synchronous>, transform_indices = @transform_4, window_bounds = array<i64: 1, 128>}, {transform_indices = @transform_5, window_bounds = array<i64: 128, 128>}]} {
    %cst = arith.constant 0.000000e+00 : f32
    %0 = vector.broadcast %cst : f32 to vector<2x1x10x8xf32>
    %cst_0 = arith.constant 0.000000e+00 : f32
    %1 = vector.broadcast %cst_0 : f32 to vector<2x10x1x8xf32>
    %c0 = arith.constant 0 : index
    %c0_1 = arith.constant 0 : index
    %c0_2 = arith.constant 0 : index
    %c0_3 = arith.constant 0 : index
    %2 = vector.load %arg7[%c0, %c0_1, %c0_2, %c0_3] : memref<2x10x10x8xf32, #tpu.memory_space<vmem>>, vector<2x1x10x8xf32>
    tpu.vector_store %arg7[%c0, %c0_1, %c0_2, %c0_3], %0 {strides = array<i32>} : memref<2x10x10x8xf32, #tpu.memory_space<vmem>>, vector<2x1x10x8xf32>,
    %c0_4 = arith.constant 0 : index
    %c9 = arith.constant 9 : index
    %c0_5 = arith.constant 0 : index
    %c0_6 = arith.constant 0 : index
    %3 = vector.load %arg7[%c0_4, %c9, %c0_5, %c0_6] : memref<2x10x10x8xf32, #tpu.memory_space<vmem>>, vector<2x1x10x8xf32>
    tpu.vector_store %arg7[%c0_4, %c9, %c0_5, %c0_6], %0 {strides = array<i32>} : memref<2x10x10x8xf32, #tpu.memory_space<vmem>>, vector<2x1x10x8xf32>,
    %c0_7 = arith.constant 0 : index
    %c0_8 = arith.constant 0 : index
    %c0_9 = arith.constant 0 : index
    %c0_10 = arith.constant 0 : index
    %4 = vector.load %arg7[%c0_7, %c0_8, %c0_9, %c0_10] : memref<2x10x10x8xf32, #tpu.memory_space<vmem>>, vector<2x10x1x8xf32>
    tpu.vector_store %arg7[%c0_7, %c0_8, %c0_9, %c0_10], %1 {strides = array<i32>} : memref<2x10x10x8xf32, #tpu.memory_space<vmem>>, vector<2x10x1x8xf32>,
    %c0_11 = arith.constant 0 : index
    %c0_12 = arith.constant 0 : index
    %c9_13 = arith.constant 9 : index
    %c0_14 = arith.constant 0 : index
    %5 = vector.load %arg7[%c0_11, %c0_12, %c9_13, %c0_14] : memref<2x10x10x8xf32, #tpu.memory_space<vmem>>, vector<2x10x1x8xf32>
    tpu.vector_store %arg7[%c0_11, %c0_12, %c9_13, %c0_14], %1 {strides = array<i32>} : memref<2x10x10x8xf32, #tpu.memory_space<vmem>>, vector<2x10x1x8xf32>,
    %c0_15 = arith.constant 0 : index
    %c0_16 = arith.constant 0 : index
    %c0_17 = arith.constant 0 : index
    %c0_18 = arith.constant 0 : index
    %6 = vector.load %arg1[%c0_15, %c0_16, %c0_17, %c0_18] : memref<16x2x8x8xf32, #tpu.memory_space<vmem>>, vector<16x2x8x8xf32>
    %7 = vector.extract_strided_slice %6 {offsets = [0, 0, 0, 0], sizes = [16, 1, 8, 8], strides = [1, 1, 1, 1]} : vector<16x2x8x8xf32> to vector<16x1x8x8xf32>
    %8 = vector.shape_cast %7 : vector<16x1x8x8xf32> to vector<16x8x8xf32>
    %9 = vector.extract_strided_slice %6 {offsets = [0, 1, 0, 0], sizes = [16, 1, 8, 8], strides = [1, 1, 1, 1]} : vector<16x2x8x8xf32> to vector<16x1x8x8xf32>
    %10 = vector.shape_cast %9 : vector<16x1x8x8xf32> to vector<16x8x8xf32>
    %11 = arith.maximumf %8, %10 : vector<16x8x8xf32>
    %12 = vector.extract_strided_slice %11 {offsets = [0, 0, 0], sizes = [16, 8, 4], strides = [1, 1, 1]} : vector<16x8x8xf32> to vector<16x8x4xf32>
    %13 = vector.extract_strided_slice %11 {offsets = [0, 0, 4], sizes = [16, 8, 4], strides = [1, 1, 1]} : vector<16x8x8xf32> to vector<16x8x4xf32>
    %14 = arith.maximumf %12, %13 : vector<16x8x4xf32>
    %15 = vector.shape_cast %14 : vector<16x8x4xf32> to vector<2x8x8x4xf32>
    %c0_19 = arith.constant 0 : index
    %c1 = arith.constant 1 : index
    %c1_20 = arith.constant 1 : index
    %c0_21 = arith.constant 0 : index
    %16 = vector.load %arg7[%c0_19, %c1, %c1_20, %c0_21] : memref<2x10x10x8xf32, #tpu.memory_space<vmem>>, vector<2x8x8x4xf32>
    tpu.vector_store %arg7[%c0_19, %c1, %c1_20, %c0_21], %15 {strides = array<i32>} : memref<2x10x10x8xf32, #tpu.memory_space<vmem>>, vector<2x8x8x4xf32>,
    %c0_22 = arith.constant 0 : index
    %c0_23 = arith.constant 0 : index
    %c0_24 = arith.constant 0 : index
    %c0_25 = arith.constant 0 : index
    %17 = vector.load %arg7[%c0_22, %c0_23, %c0_24, %c0_25] : memref<2x10x10x8xf32, #tpu.memory_space<vmem>>, vector<2x8x8x4xf32>
    %18 = vector.shape_cast %17 : vector<2x8x8x4xf32> to vector<128x4xf32>
    %c0_26 = arith.constant 0 : index
    %c0_27 = arith.constant 0 : index
    %c1_28 = arith.constant 1 : index
    %c0_29 = arith.constant 0 : index
    %19 = vector.load %arg7[%c0_26, %c0_27, %c1_28, %c0_29] : memref<2x10x10x8xf32, #tpu.memory_space<vmem>>, vector<2x8x8x4xf32>
    %20 = vector.shape_cast %19 : vector<2x8x8x4xf32> to vector<128x4xf32>
    %c0_30 = arith.constant 0 : index
    %c0_31 = arith.constant 0 : index
    %c2 = arith.constant 2 : index
    %c0_32 = arith.constant 0 : index
    %21 = vector.load %arg7[%c0_30, %c0_31, %c2, %c0_32] : memref<2x10x10x8xf32, #tpu.memory_space<vmem>>, vector<2x8x8x4xf32>
    %22 = vector.shape_cast %21 : vector<2x8x8x4xf32> to vector<128x4xf32>
    %c0_33 = arith.constant 0 : index
    %c1_34 = arith.constant 1 : index
    %c0_35 = arith.constant 0 : index
    %c0_36 = arith.constant 0 : index
    %23 = vector.load %arg7[%c0_33, %c1_34, %c0_35, %c0_36] : memref<2x10x10x8xf32, #tpu.memory_space<vmem>>, vector<2x8x8x4xf32>
    %24 = vector.shape_cast %23 : vector<2x8x8x4xf32> to vector<128x4xf32>
    %c0_37 = arith.constant 0 : index
    %c1_38 = arith.constant 1 : index
    %c1_39 = arith.constant 1 : index
    %c0_40 = arith.constant 0 : index
    %25 = vector.load %arg7[%c0_37, %c1_38, %c1_39, %c0_40] : memref<2x10x10x8xf32, #tpu.memory_space<vmem>>, vector<2x8x8x4xf32>
    %26 = vector.shape_cast %25 : vector<2x8x8x4xf32> to vector<128x4xf32>
    %c0_41 = arith.constant 0 : index
    %c1_42 = arith.constant 1 : index
    %c2_43 = arith.constant 2 : index
    %c0_44 = arith.constant 0 : index
    %27 = vector.load %arg7[%c0_41, %c1_42, %c2_43, %c0_44] : memref<2x10x10x8xf32, #tpu.memory_space<vmem>>, vector<2x8x8x4xf32>
    %28 = vector.shape_cast %27 : vector<2x8x8x4xf32> to vector<128x4xf32>
    %c0_45 = arith.constant 0 : index
    %c2_46 = arith.constant 2 : index
    %c0_47 = arith.constant 0 : index
    %c0_48 = arith.constant 0 : index
    %29 = vector.load %arg7[%c0_45, %c2_46, %c0_47, %c0_48] : memref<2x10x10x8xf32, #tpu.memory_space<vmem>>, vector<2x8x8x4xf32>
    %30 = vector.shape_cast %29 : vector<2x8x8x4xf32> to vector<128x4xf32>
    %c0_49 = arith.constant 0 : index
    %c2_50 = arith.constant 2 : index
    %c1_51 = arith.constant 1 : index
    %c0_52 = arith.constant 0 : index
    %31 = vector.load %arg7[%c0_49, %c2_50, %c1_51, %c0_52] : memref<2x10x10x8xf32, #tpu.memory_space<vmem>>, vector<2x8x8x4xf32>
    %32 = vector.shape_cast %31 : vector<2x8x8x4xf32> to vector<128x4xf32>
    %c0_53 = arith.constant 0 : index
    %c2_54 = arith.constant 2 : index
    %c2_55 = arith.constant 2 : index
    %c0_56 = arith.constant 0 : index
    %33 = vector.load %arg7[%c0_53, %c2_54, %c2_55, %c0_56] : memref<2x10x10x8xf32, #tpu.memory_space<vmem>>, vector<2x8x8x4xf32>
    %34 = vector.shape_cast %33 : vector<2x8x8x4xf32> to vector<128x4xf32>
    %35 = tpu.concatenate %18, %20, %22, %24, %26, %28, %30, %32, %34 in 1 : vector<128x4xf32>, vector<128x4xf32>, vector<128x4xf32>, vector<128x4xf32>, vector<128x4xf32>, vector<128x4xf32>, vector<128x4xf32>, vector<128x4xf32>, vector<128x4xf32> -> vector<128x36xf32>
    %c0_57 = arith.constant 0 : index
    %c0_58 = arith.constant 0 : index
    %c0_59 = arith.constant 0 : index
    %36 = vector.load %arg2[%c0_57, %c0_58, %c0_59] : memref<9x4x136xf32, #tpu.memory_space<vmem>>, vector<9x4x136xf32>
    %37 = vector.shape_cast %36 : vector<9x4x136xf32> to vector<36x136xf32>
    %cst_60 = arith.constant dense<0.000000e+00> : vector<128x136xf32>
    %38 = tpu.matmul %35, %37, %cst_60 {dimension_numbers = #tpu.dot_dimension_numbers<[1], [0], [0], [1], [0, 0, 1, 1], [], []>} : vector<128x36xf32>, vector<36x136xf32>, vector<128x136xf32> -> vector<128x136xf32>
    %c0_61 = arith.constant 0 : index
    %c0_62 = arith.constant 0 : index
    %39 = vector.load %arg3[%c0_61, %c0_62] : memref<1x136xf32, #tpu.memory_space<vmem>>, vector<1x136xf32>
    %40 = vector.broadcast %39 : vector<1x136xf32> to vector<128x136xf32>
    %41 = arith.addf %38, %40 : vector<128x136xf32>
    %42 = vector.extract_strided_slice %41 {offsets = [0, 0], sizes = [128, 8], strides = [1, 1]} : vector<128x136xf32> to vector<128x8xf32>
    %cst_63 = arith.constant 0.000000e+00 : f32
    %43 = vector.broadcast %cst_63 : f32 to vector<128x8xf32>
    %44 = arith.maximumf %42, %43 : vector<128x8xf32>
    %45 = vector.extract_strided_slice %41 {offsets = [0, 8], sizes = [128, 128], strides = [1, 1]} : vector<128x136xf32> to vector<128x128xf32>
    %46 = vector.shape_cast %44 : vector<128x8xf32> to vector<2x8x8x8xf32>
    %c0_64 = arith.constant 0 : index
    %c1_65 = arith.constant 1 : index
    %c1_66 = arith.constant 1 : index
    %c0_67 = arith.constant 0 : index
    %47 = vector.load %arg7[%c0_64, %c1_65, %c1_66, %c0_67] : memref<2x10x10x8xf32, #tpu.memory_space<vmem>>, vector<2x8x8x8xf32>
    tpu.vector_store %arg7[%c0_64, %c1_65, %c1_66, %c0_67], %46 {strides = array<i32>} : memref<2x10x10x8xf32, #tpu.memory_space<vmem>>, vector<2x8x8x8xf32>,
    %c0_68 = arith.constant 0 : index
    %c0_69 = arith.constant 0 : index
    %c0_70 = arith.constant 0 : index
    %c0_71 = arith.constant 0 : index
    %48 = vector.load %arg7[%c0_68, %c0_69, %c0_70, %c0_71] : memref<2x10x10x8xf32, #tpu.memory_space<vmem>>, vector<2x8x8x8xf32>
    %49 = vector.shape_cast %48 : vector<2x8x8x8xf32> to vector<128x8xf32>
    %c0_72 = arith.constant 0 : index
    %c0_73 = arith.constant 0 : index
    %c1_74 = arith.constant 1 : index
    %c0_75 = arith.constant 0 : index
    %50 = vector.load %arg7[%c0_72, %c0_73, %c1_74, %c0_75] : memref<2x10x10x8xf32, #tpu.memory_space<vmem>>, vector<2x8x8x8xf32>
    %51 = vector.shape_cast %50 : vector<2x8x8x8xf32> to vector<128x8xf32>
    %c0_76 = arith.constant 0 : index
    %c0_77 = arith.constant 0 : index
    %c2_78 = arith.constant 2 : index
    %c0_79 = arith.constant 0 : index
    %52 = vector.load %arg7[%c0_76, %c0_77, %c2_78, %c0_79] : memref<2x10x10x8xf32, #tpu.memory_space<vmem>>, vector<2x8x8x8xf32>
    %53 = vector.shape_cast %52 : vector<2x8x8x8xf32> to vector<128x8xf32>
    %c0_80 = arith.constant 0 : index
    %c1_81 = arith.constant 1 : index
    %c0_82 = arith.constant 0 : index
    %c0_83 = arith.constant 0 : index
    %54 = vector.load %arg7[%c0_80, %c1_81, %c0_82, %c0_83] : memref<2x10x10x8xf32, #tpu.memory_space<vmem>>, vector<2x8x8x8xf32>
    %55 = vector.shape_cast %54 : vector<2x8x8x8xf32> to vector<128x8xf32>
    %c0_84 = arith.constant 0 : index
    %c1_85 = arith.constant 1 : index
    %c1_86 = arith.constant 1 : index
    %c0_87 = arith.constant 0 : index
    %56 = vector.load %arg7[%c0_84, %c1_85, %c1_86, %c0_87] : memref<2x10x10x8xf32, #tpu.memory_space<vmem>>, vector<2x8x8x8xf32>
    %57 = vector.shape_cast %56 : vector<2x8x8x8xf32> to vector<128x8xf32>
    %c0_88 = arith.constant 0 : index
    %c1_89 = arith.constant 1 : index
    %c2_90 = arith.constant 2 : index
    %c0_91 = arith.constant 0 : index
    %58 = vector.load %arg7[%c0_88, %c1_89, %c2_90, %c0_91] : memref<2x10x10x8xf32, #tpu.memory_space<vmem>>, vector<2x8x8x8xf32>
    %59 = vector.shape_cast %58 : vector<2x8x8x8xf32> to vector<128x8xf32>
    %c0_92 = arith.constant 0 : index
    %c2_93 = arith.constant 2 : index
    %c0_94 = arith.constant 0 : index
    %c0_95 = arith.constant 0 : index
    %60 = vector.load %arg7[%c0_92, %c2_93, %c0_94, %c0_95] : memref<2x10x10x8xf32, #tpu.memory_space<vmem>>, vector<2x8x8x8xf32>
    %61 = vector.shape_cast %60 : vector<2x8x8x8xf32> to vector<128x8xf32>
    %c0_96 = arith.constant 0 : index
    %c2_97 = arith.constant 2 : index
    %c1_98 = arith.constant 1 : index
    %c0_99 = arith.constant 0 : index
    %62 = vector.load %arg7[%c0_96, %c2_97, %c1_98, %c0_99] : memref<2x10x10x8xf32, #tpu.memory_space<vmem>>, vector<2x8x8x8xf32>
    %63 = vector.shape_cast %62 : vector<2x8x8x8xf32> to vector<128x8xf32>
    %c0_100 = arith.constant 0 : index
    %c2_101 = arith.constant 2 : index
    %c2_102 = arith.constant 2 : index
    %c0_103 = arith.constant 0 : index
    %64 = vector.load %arg7[%c0_100, %c2_101, %c2_102, %c0_103] : memref<2x10x10x8xf32, #tpu.memory_space<vmem>>, vector<2x8x8x8xf32>
    %65 = vector.shape_cast %64 : vector<2x8x8x8xf32> to vector<128x8xf32>
    %66 = tpu.concatenate %49, %51, %53, %55, %57, %59, %61, %63, %65 in 1 : vector<128x8xf32>, vector<128x8xf32>, vector<128x8xf32>, vector<128x8xf32>, vector<128x8xf32>, vector<128x8xf32>, vector<128x8xf32>, vector<128x8xf32>, vector<128x8xf32> -> vector<128x72xf32>
    %c0_104 = arith.constant 0 : index
    %c0_105 = arith.constant 0 : index
    %c0_106 = arith.constant 0 : index
    %67 = vector.load %arg4[%c0_104, %c0_105, %c0_106] : memref<9x8x128xf32, #tpu.memory_space<vmem>>, vector<9x8x128xf32>
    %68 = vector.shape_cast %67 : vector<9x8x128xf32> to vector<72x128xf32>
    %cst_107 = arith.constant dense<0.000000e+00> : vector<128x128xf32>
    %69 = tpu.matmul %66, %68, %cst_107 {dimension_numbers = #tpu.dot_dimension_numbers<[1], [0], [0], [1], [0, 0, 1, 1], [], []>} : vector<128x72xf32>, vector<72x128xf32>, vector<128x128xf32> -> vector<128x128xf32>
    %c0_108 = arith.constant 0 : index
    %c0_109 = arith.constant 0 : index
    %70 = vector.load %arg5[%c0_108, %c0_109] : memref<1x128xf32, #tpu.memory_space<vmem>>, vector<1x128xf32>
    %71 = vector.broadcast %70 : vector<1x128xf32> to vector<128x128xf32>
    %72 = arith.addf %69, %71 : vector<128x128xf32>
    %73 = arith.addf %72, %45 : vector<128x128xf32>
    %cst_110 = arith.constant 0.000000e+00 : f32
    %74 = vector.broadcast %cst_110 : f32 to vector<128x128xf32>
    %75 = arith.maximumf %73, %74 : vector<128x128xf32>
    %c0_111 = arith.constant 0 : index
    %c0_112 = arith.constant 0 : index
    %76 = vector.load %arg6[%c0_111, %c0_112] : memref<128x128xf32, #tpu.memory_space<vmem>>, vector<128x128xf32>
    tpu.vector_store %arg6[%c0_111, %c0_112], %75 {strides = array<i32>} : memref<128x128xf32, #tpu.memory_space<vmem>>, vector<128x128xf32>,
    return
  }
  func.func @transform_0(%arg0: i32) -> (i32, i32, i32, i32) {
    %c0_i32 = arith.constant 0 : i32
    %c0_i32_0 = arith.constant 0 : i32
    %c0_i32_1 = arith.constant 0 : i32
    %c0_i32_2 = arith.constant 0 : i32
    return %arg0, %c0_i32, %c0_i32_0, %c0_i32_1 : i32, i32, i32, i32
  }
  func.func @transform_1(%arg0: i32) -> (i32, i32, i32) {
    %c0_i32 = arith.constant 0 : i32
    %c0_i32_0 = arith.constant 0 : i32
    %c0_i32_1 = arith.constant 0 : i32
    %c0_i32_2 = arith.constant 0 : i32
    return %c0_i32, %c0_i32_0, %c0_i32_1 : i32, i32, i32
  }
  func.func @transform_2(%arg0: i32) -> (i32, i32) {
    %c0_i32 = arith.constant 0 : i32
    %c0_i32_0 = arith.constant 0 : i32
    %c0_i32_1 = arith.constant 0 : i32
    return %c0_i32, %c0_i32_0 : i32, i32
  }
  func.func @transform_3(%arg0: i32) -> (i32, i32, i32) {
    %c0_i32 = arith.constant 0 : i32
    %c0_i32_0 = arith.constant 0 : i32
    %c0_i32_1 = arith.constant 0 : i32
    %c0_i32_2 = arith.constant 0 : i32
    return %c0_i32, %c0_i32_0, %c0_i32_1 : i32, i32, i32
  }
  func.func @transform_4(%arg0: i32) -> (i32, i32) {
    %c0_i32 = arith.constant 0 : i32
    %c0_i32_0 = arith.constant 0 : i32
    %c0_i32_1 = arith.constant 0 : i32
    return %c0_i32, %c0_i32_0 : i32, i32
  }
  func.func @transform_5(%arg0: i32) -> (i32, i32) {
    %c0_i32 = arith.constant 0 : i32
    %c0_i32_0 = arith.constant 0 : i32
    return %arg0, %c0_i32 : i32, i32
  }
}

</mosaic_0001>

<bundles_post_ra>
// kernel: down_forward.1
= control target key start
LH: loop header
LB: loop body
LE: loop exit
PB: predicated region body
PF: predicated region fallthrough
CT: control target
= control target key end

     0   :  { %s2464_s26 = smov 124   ;;  %vm20_vm0 = vcmask 64512   ;;  %vm22_vm1 = vcmask 58368   ;;  %v2465_v17 = vmov 0.0   ;;  %s2466_s6 = smov 4   ;;  %vm31_vm2 = vcmask 57344   ;;  %s4559_s0 = inlined_call_operand.vmem [shape: f32[16,2,8,8], index: 0, kind: input, shape index: {}]   ;;  %s4560_s1 = inlined_call_operand.vmem [shape: f32[9,4,136], index: 1, kind: input, shape index: {}]   ;;  %s4561_s2 = inlined_call_operand.vmem [shape: f32[1,136], index: 2, kind: input, shape index: {}]   ;;  %s4562_s3 = inlined_call_operand.vmem [shape: f32[9,8,128], index: 3, kind: input, shape index: {}]   ;;  %s4563_s4 = inlined_call_operand.vmem [shape: f32[1,128], index: 4, kind: input, shape index: {}]   ;;  %s4564_s5 = inlined_call_operand.vmem [shape: f32[128,128], index: 5, kind: output, shape index: {}]  }
   0x1   :  { %v76_v0 = vld [vmem:[%s4559_s0 + $0x20] sm:$0xff]  ;;  %v77_v1 = vld [vmem:[%s4559_s0 + $0x28] sm:$0xff]  ;;  %v78_v6 = vld [vmem:[%s4559_s0 + $0x30] sm:$0xff]  ;;  %21 = vst.msk [vmem:[#allocation2] sm:$0xff] %vm20_vm0, %v2465_v17  ;;  %s2467_s11 = smov 8   ;;  %vm201_vm3 = vcmask 31744  }
   0x2   :  { %v72_v2 = vld [vmem:[%s4559_s0] sm:$0xff]  ;;  %v2518_v3 = vmax.f32 %v76_v0, %v77_v1  ;;  %v73_v4 = vld [vmem:[%s4559_s0 + $0x8] sm:$0xff]  ;;  %v79_v7 = vld [vmem:[%s4559_s0 + $0x38] sm:$0xff]  ;;  %23 = vst.msk [vmem:[#allocation2 + $0x8] sm:$0x3] %vm22_vm1, %v2465_v17  ;;  %s2470_s12 = smov 20  }
   0x3   :  { %v2523_v5 = vmax.f32 %v72_v2, %v73_v4  ;;  %v80_v8 = vld [vmem:[%s4559_s0 + $0x40] sm:$0xff]  ;;  %v81_v9 = vld [vmem:[%s4559_s0 + $0x48] sm:$0xff]  ;;  %v74_v10 = vld [vmem:[%s4559_s0 + $0x10] sm:$0xff]  ;;  %v2549_v13 = vmax.f32 %v78_v6, %v79_v7  ;;  %24 = vst.msk [vmem:[#allocation2 + $0xa0] sm:$0xff] %vm20_vm0, %v2465_v17  ;;  %s2471_s13 = smov 24   ;;  %s2472_s14 = smov 28  }
   0x4   :  { %140 = vrot.lane.b32.xlu1 %v2518_v3, %s2464_s26  ;;  %v75_v11 = vld [vmem:[%s4559_s0 + $0x18] sm:$0xff]  ;;  %v2547_v12 = vmax.f32 %v80_v8, %v81_v9  ;;  %v82_v15 = vld [vmem:[%s4559_s0 + $0x50] sm:$0xff]  ;;  %25 = vst.msk [vmem:[#allocation2 + $0xa8] sm:$0x3] %vm22_vm1, %v2465_v17  ;;  %v84_v21 = vld [vmem:[%s4559_s0 + $0x60] sm:$0xff]  ;;  %vm907_vm4 = vcmask 97280  }
   0x5   :  { %136 = vrot.lane.b32.xlu0 %v2523_v5, %s2464_s26  ;;  %v2553_v14 = vmax.f32 %v74_v10, %v75_v11  ;;  %v83_v16 = vld [vmem:[%s4559_s0 + $0x58] sm:$0xff]  ;;  %v86_v19 = vld [vmem:[%s4559_s0 + $0x70] sm:$0xff]  ;;  %27 = vst.msk [vmem:[#allocation2 + $0x90] sm:$0xff] %vm20_vm0, %v2465_v17  ;;  %v85_v22 = vld [vmem:[%s4559_s0 + $0x68] sm:$0xff]  ;;  %vm924_vm5 = vcmask 130048   ;;  %vm941_vm6 = vcmask 162816  }
   0x6   :  { %144 = vrot.lane.b32.xlu2 %v2547_v12, %s2464_s26  ;;  %v2569_v18 = vmax.f32 %v82_v15, %v83_v16  ;;  %v87_v20 = vld [vmem:[%s4559_s0 + $0x78] sm:$0xff]  ;;  %28 = vst.msk [vmem:[#allocation2 + $0x98] sm:$0x3] %vm22_vm1, %v2465_v17  ;;  %v2599_v24 = vmax.f32 %v84_v21, %v85_v22  ;;  %v88_v25 = vld [vmem:[%s4559_s0 + $0x80] sm:$0xff]  ;;  %v89_v26 = vld [vmem:[%s4559_s0 + $0x88] sm:$0xff]  ;;  %s2473_s15 = smov 32  }
   0x7   :  { %29 = vst.msk [vmem:[#allocation2 + $0x130] sm:$0xff] %vm20_vm0, %v2465_v17  ;;  %v2593_v23 = vmax.f32 %v86_v19, %v87_v20  ;;  %v2609_v27 = vmax.f32 %v88_v25, %v89_v26  ;;  %v92_v28 = vld [vmem:[%s4559_s0 + $0xa0] sm:$0xff]  ;;  %v93_v29 = vld [vmem:[%s4559_s0 + $0xa8] sm:$0xff]  ;;  %v90_v30 = vld [vmem:[%s4559_s0 + $0x90] sm:$0xff]  ;;  %vm1116_vm7 = vcmask 1043456   ;;  %vm958_vm8 = vcmask 195584  }
   0x8   :  { %30 = vst.msk [vmem:[#allocation2 + $0x138] sm:$0x3] %vm22_vm1, %v2465_v17  ;;  %v91_v31 = vld [vmem:[%s4559_s0 + $0x98] sm:$0xff]  ;;  %v2625_v32 = vmax.f32 %v92_v28, %v93_v29  ;;  %v94_v34 = vld [vmem:[%s4559_s0 + $0xb0] sm:$0xff]  ;;  %v96_v39 = vld [vmem:[%s4559_s0 + $0xc0] sm:$0xff]  ;;  %vm975_vm9 = vcmask 228352  }
   0x9   :  { %v2629_v33 = vmax.f32 %v90_v30, %v91_v31  ;;  %v95_v35 = vld [vmem:[%s4559_s0 + $0xb8] sm:$0xff]  ;;  %v98_v37 = vld [vmem:[%s4559_s0 + $0xd0] sm:$0xff]  ;;  %v97_v40 = vld [vmem:[%s4559_s0 + $0xc8] sm:$0xff]  ;;  %52 = vst.msk [vmem:[#allocation2 + $0x9] sm:$0x1] %vm31_vm2, %v2465_v17  ;;  %vm992_vm10 = vcmask 261120  }
   0xa   :  { %v2639_v36 = vmax.f32 %v94_v34, %v95_v35  ;;  %v99_v38 = vld [vmem:[%s4559_s0 + $0xd8] sm:$0xff]  ;;  %v2659_v42 = vmax.f32 %v96_v39, %v97_v40  ;;  %v100_v43 = vld [vmem:[%s4559_s0 + $0xe0] sm:$0xff]  ;;  %v101_v44 = vld [vmem:[%s4559_s0 + $0xe8] sm:$0xff]  ;;  %32 = vst.msk [vmem:[#allocation2] sm:$0x1] %vm31_vm2, %v2465_v17  ;;  %vm1067_vm11 = vcmask 293888  }
   0xb   :  { %v2655_v41 = vmax.f32 %v98_v37, %v99_v38  ;;  %v2669_v45 = vmax.f32 %v100_v43, %v101_v44  ;;  %v234_v46 = vld [vmem:[#allocation2 + $0x1] sm:$0xff]  ;;  %33 = vst.msk [vmem:[#allocation2 + $0x10] sm:$0x1] %vm31_vm2, %v2465_v17  ;;  %v103_v48 = vld [vmem:[%s4559_s0 + $0xf8] sm:$0xff]  ;;  %vm2003_vm12 = vcmask 326656   ;;  %vm2020_vm13 = vcmask 392192  }
   0xc   :  { %142 = vrot.lane.b32.xlu1 %v2549_v13, %s2464_s26  ;;  %34 = vst.msk [vmem:[#allocation2 + $0x20] sm:$0x1] %vm31_vm2, %v2465_v17  ;;  %v102_v47 = vld [vmem:[%s4559_s0 + $0xf0] sm:$0xff]  ;;  %s2468_s0 = smov 12   ;;  %vm2037_vm14 = vcmask 457728   ;;  %vm2054_vm15 = vcmask 523264  }
   0xd   :  { %138 = vrot.lane.b32.xlu0 %v2553_v14, %s2464_s26  ;;  %35 = vst.msk [vmem:[#allocation2 + $0x30] sm:$0x1] %vm31_vm2, %v2465_v17  ;;  %v2696_v49 = vmax.f32 %v102_v47, %v103_v48  ;;  %v242_v51 = vld [vmem:[#allocation2 + $0xa1] sm:$0xff]  ;;  %vm2294_vm1 = vcmask 982016  }
   0xe   :  { %146 = vrot.lane.b32.xlu2 %v2569_v18, %s2464_s26  ;;  %36 = vst.msk [vmem:[#allocation2 + $0x40] sm:$0x1] %vm31_vm2, %v2465_v17 }
   0xf   :  { %37 = vst.msk [vmem:[#allocation2 + $0x50] sm:$0x1] %vm31_vm2, %v2465_v17 }
  0x10   :  { %v250_v50 = vld [vmem:[#allocation2 + $0x2] sm:$0xff]  ;;  %38 = vst.msk [vmem:[#allocation2 + $0x60] sm:$0x1] %vm31_vm2, %v2465_v17 }
  0x11   :  { %39 = vst.msk [vmem:[#allocation2 + $0x70] sm:$0x1] %vm31_vm2, %v2465_v17 }
  0x12   :  { %40 = vst.msk [vmem:[#allocation2 + $0x80] sm:$0x1] %vm31_vm2, %v2465_v17 }
  0x13   :  { %41 = vst.msk [vmem:[#allocation2 + $0x90] sm:$0x1] %vm31_vm2, %v2465_v17 }
  0x14   :  { %150 = vrot.lane.b32.xlu1 %v2593_v23, %s2464_s26  ;;  %42 = vst.msk [vmem:[#allocation2 + $0xa0] sm:$0x1] %vm31_vm2, %v2465_v17 }
  0x15   :  { %148 = vrot.lane.b32.xlu0 %v2599_v24, %s2464_s26  ;;  %43 = vst.msk [vmem:[#allocation2 + $0xb0] sm:$0x1] %vm31_vm2, %v2465_v17 }
  0x16   :  { %152 = vrot.lane.b32.xlu2 %v2609_v27, %s2464_s26  ;;  %44 = vst.msk [vmem:[#allocation2 + $0xc0] sm:$0x1] %vm31_vm2, %v2465_v17 }
  0x17   :  { %45 = vst.msk [vmem:[#allocation2 + $0xd0] sm:$0x1] %vm31_vm2, %v2465_v17 }
  0x18   :  { %46 = vst.msk [vmem:[#allocation2 + $0xe0] sm:$0x1] %vm31_vm2, %v2465_v17 }
  0x19   :  { %47 = vst.msk [vmem:[#allocation2 + $0xf0] sm:$0x1] %vm31_vm2, %v2465_v17 }
  0x1a   :  { %48 = vst.msk [vmem:[#allocation2 + $0x100] sm:$0x1] %vm31_vm2, %v2465_v17 }
  0x1b   :  { %49 = vst.msk [vmem:[#allocation2 + $0x110] sm:$0x1] %vm31_vm2, %v2465_v17 }
  0x1c   :  { %156 = vrot.lane.b32.xlu1 %v2625_v32, %s2464_s26  ;;  %50 = vst.msk [vmem:[#allocation2 + $0x120] sm:$0x1] %vm31_vm2, %v2465_v17 }
  0x1d   :  { %154 = vrot.lane.b32.xlu0 %v2629_v33, %s2464_s26  ;;  %51 = vst.msk [vmem:[#allocation2 + $0x130] sm:$0x1] %vm31_vm2, %v2465_v17 }
  0x1e   :  { %158 = vrot.lane.b32.xlu2 %v2639_v36, %s2464_s26  ;;  %53 = vst.msk [vmem:[#allocation2 + $0x19] sm:$0x1] %vm31_vm2, %v2465_v17 }
  0x1f   :  { %54 = vst.msk [vmem:[#allocation2 + $0x29] sm:$0x1] %vm31_vm2, %v2465_v17 }
  0x20   :  { %55 = vst.msk [vmem:[#allocation2 + $0x39] sm:$0x1] %vm31_vm2, %v2465_v17 }
  0x21   :  { %56 = vst.msk [vmem:[#allocation2 + $0x49] sm:$0x1] %vm31_vm2, %v2465_v17 }
  0x22   :  { %57 = vst.msk [vmem:[#allocation2 + $0x59] sm:$0x1] %vm31_vm2, %v2465_v17 }
  0x23   :  { %58 = vst.msk [vmem:[#allocation2 + $0x69] sm:$0x1] %vm31_vm2, %v2465_v17 }
  0x24   :  { %162 = vrot.lane.b32.xlu1 %v2655_v41, %s2464_s26  ;;  %59 = vst.msk [vmem:[#allocation2 + $0x79] sm:$0x1] %vm31_vm2, %v2465_v17 }
  0x25   :  { %160 = vrot.lane.b32.xlu0 %v2659_v42, %s2464_s26  ;;  %60 = vst.msk [vmem:[#allocation2 + $0x89] sm:$0x1] %vm31_vm2, %v2465_v17 }
  0x26   :  { %164 = vrot.lane.b32.xlu2 %v2669_v45, %s2464_s26  ;;  %61 = vst.msk [vmem:[#allocation2 + $0x99] sm:$0x1] %vm31_vm2, %v2465_v17 }
  0x27   :  { %62 = vst.msk [vmem:[#allocation2 + $0xa9] sm:$0x1] %vm31_vm2, %v2465_v17 }
  0x28   :  { %63 = vst.msk [vmem:[#allocation2 + $0xb9] sm:$0x1] %vm31_vm2, %v2465_v17 }
  0x29   :  { %64 = vst.msk [vmem:[#allocation2 + $0xc9] sm:$0x1] %vm31_vm2, %v2465_v17 }
  0x2a   :  { %65 = vst.msk [vmem:[#allocation2 + $0xd9] sm:$0x1] %vm31_vm2, %v2465_v17 }
  0x2b   :  { %66 = vst.msk [vmem:[#allocation2 + $0xe9] sm:$0x1] %vm31_vm2, %v2465_v17 }
  0x2c   :  { %379 = vrot.lane.b32.xlu1 %v234_v46, %s2466_s6  ;;  %67 = vst.msk [vmem:[#allocation2 + $0xf9] sm:$0x1] %vm31_vm2, %v2465_v17 }
  0x2d   :  { %166 = vrot.lane.b32.xlu0 %v2696_v49, %s2464_s26  ;;  %68 = vst.msk [vmem:[#allocation2 + $0x109] sm:$0x1] %vm31_vm2, %v2465_v17  ;;  %s2469_s26 = smov 16  }
  0x2e   :  { %443 = vrot.lane.b32.xlu2 %v250_v50, %s2467_s11  ;;  %69 = vst.msk [vmem:[#allocation2 + $0x119] sm:$0x1] %vm31_vm2, %v2465_v17  ;;  %v258_v60 = vld [vmem:[#allocation2 + $0xa2] sm:$0xff] }
  0x2f   :  { %70 = vst.msk [vmem:[#allocation2 + $0x129] sm:$0x1] %vm31_vm2, %v2465_v17 }
  0x30   :  { %71 = vst.msk [vmem:[#allocation2 + $0x139] sm:$0x1] %vm31_vm2, %v2465_v17 }
  0x34   :  { %459 = vrot.lane.b32.xlu1 %v258_v60, %s2467_s11 }
  0x35   :  { %395 = vrot.lane.b32.xlu0 %v242_v51, %s2466_s6 }
  0x60   :  { %v145_v52 = vpop.permute.xlu2 %144 }
  0x61   :  { %v188_v53 = vmax.f32 %v2547_v12, %v145_v52 }
  0x63   :  { %206 = vst.msk [vmem:[#allocation2 + $0x51] sm:$0xff] %vm201_vm3, %v188_v53 }
  0x68   :  { %v147_v54 = vpop.permute.xlu2 %146 }
  0x69   :  { %v189_v61 = vmax.f32 %v2569_v18, %v147_v54 }
  0x6a   :  { %v2814_v20 = vld [vmem:[#allocation2 + $0x51] sm:$0xff] }
  0x6b   :  { %207 = vst.msk [vmem:[#allocation2 + $0x61] sm:$0xff] %vm201_vm3, %v189_v61  ;;  %v2916_v51 = vld [vmem:[#allocation2 + $0x50] sm:$0xff] }
  0x70   :  { %v153_v55 = vpop.permute.xlu2 %152 }
  0x71   :  { %v192_v62 = vmax.f32 %v2609_v27, %v153_v55 }
  0x72   :  { %v2795_v10 = vld [vmem:[#allocation2 + $0x61] sm:$0xff] }
  0x73   :  { %210 = vst.msk [vmem:[#allocation2 + $0xb1] sm:$0xff] %vm201_vm3, %v192_v62  ;;  %v2873_v38 = vld [vmem:[#allocation2 + $0x62] sm:$0xff] }
  0x74   :  { %4607 = vst [vmem:[#allocation3_spill] sm:$0xff] %v2873_v38 }
  0x76   :  { %v141_v56 = vpop.permute.xlu1 %140 }
  0x77   :  { %v186_v57 = vmax.f32 %v2518_v3, %v141_v56  ;;  %v137_v58 = vpop.permute.xlu0 %136  ;;  %v2937_v56 = vld [vmem:[#allocation2 + $0x60] sm:$0xff] }
  0x78   :  { %v184_v59 = vmax.f32 %v2523_v5, %v137_v58  ;;  %v159_v63 = vpop.permute.xlu2 %158 }
  0x79   :  { %204 = vst.msk [vmem:[#allocation2 + $0x31] sm:$0xff] %vm201_vm3, %v186_v57  ;;  %v195_v0 = vmax.f32 %v2639_v36, %v159_v63  ;;  %v2867_v36 = vld [vmem:[#allocation2 + $0x52] sm:$0xff] }
  0x7a   :  { %202 = vst.msk [vmem:[#allocation2 + $0x11] sm:$0xff] %vm201_vm3, %v184_v59  ;;  %v2811_v17 = vld [vmem:[#allocation2 + $0xb1] sm:$0xff] }
  0x7b   :  { %213 = vst.msk [vmem:[#allocation2 + $0xe1] sm:$0xff] %vm201_vm3, %v195_v0  ;;  %v2951_v60 = vld [vmem:[#allocation2 + $0xb0] sm:$0xff] }
  0x7e   :  { %v143_v1 = vpop.permute.xlu1 %142 }
  0x7f   :  { %v187_v2 = vmax.f32 %v2549_v13, %v143_v1  ;;  %v139_v3 = vpop.permute.xlu0 %138 }
  0x80   :  { %v185_v4 = vmax.f32 %v2553_v14, %v139_v3  ;;  %v2783_v5 = vld [vmem:[#allocation2 + $0x31] sm:$0xff]  ;;  %v165_v7 = vpop.permute.xlu2 %164 }
  0x81   :  { %205 = vst.msk [vmem:[#allocation2 + $0x41] sm:$0xff] %vm201_vm3, %v187_v2  ;;  %385 = vrot.lane.b32.xlu1 %v2783_v5, %s2466_s6  ;;  %v2788_v6 = vld [vmem:[#allocation2 + $0x11] sm:$0xff]  ;;  %v198_v8 = vmax.f32 %v2669_v45, %v165_v7 }
  0x82   :  { %203 = vst.msk [vmem:[#allocation2 + $0x21] sm:$0xff] %vm201_vm3, %v185_v4  ;;  %381 = vrot.lane.b32.xlu2 %v2788_v6, %s2466_s6  ;;  %v2859_v34 = vld [vmem:[#allocation2 + $0x12] sm:$0xff]  ;;  %v2897_v44 = vld [vmem:[#allocation2 + $0xe2] sm:$0xff] }
  0x83   :  { %216 = vst.msk [vmem:[#allocation2 + $0x111] sm:$0xff] %vm201_vm3, %v198_v8  ;;  %v2861_v35 = vld [vmem:[#allocation2 + $0x32] sm:$0xff]  ;;  %v2967_v1 = vld [vmem:[#allocation2 + $0xe0] sm:$0xff] }
  0x84   :  { %4610 = vst [vmem:[#allocation6_spill] sm:$0xff] %v2897_v44  ;;  %v2921_v52 = vld [vmem:[#allocation2 + $0x10] sm:$0xff] }
  0x85   :  { %4614 = vst [vmem:[#allocation10_spill] sm:$0xff] %v2921_v52  ;;  %v2923_v53 = vld [vmem:[#allocation2 + $0x30] sm:$0xff] }
  0x86   :  { %v151_v9 = vpop.permute.xlu1 %150  ;;  %4615 = vst [vmem:[#allocation11_spill] sm:$0xff] %v2923_v53 }
  0x87   :  { %v191_v11 = vmax.f32 %v2593_v23, %v151_v9  ;;  %v149_v12 = vpop.permute.xlu0 %148 }
  0x88   :  { %v190_v13 = vmax.f32 %v2599_v24, %v149_v12  ;;  %v2799_v14 = vld [vmem:[#allocation2 + $0x41] sm:$0xff]  ;;  %v2929_v54 = vpop.permute.xlu2 %443 }
  0x89   :  { %209 = vst.msk [vmem:[#allocation2 + $0x81] sm:$0xff] %vm201_vm3, %v191_v11  ;;  %391 = vrot.lane.b32.xlu1 %v2795_v10, %s2466_s6  ;;  %v2804_v15 = vld [vmem:[#allocation2 + $0x21] sm:$0xff] }
  0x8a   :  { %208 = vst.msk [vmem:[#allocation2 + $0x71] sm:$0xff] %vm201_vm3, %v190_v13  ;;  %387 = vrot.lane.b32.xlu2 %v2799_v14, %s2466_s6  ;;  %383 = vrot.lane.b32.xlu0 %v2804_v15, %s2466_s6  ;;  %v2827_v24 = vld [vmem:[#allocation2 + $0xe1] sm:$0xff]  ;;  %v2843_v30 = vld [vmem:[#allocation2 + $0x111] sm:$0xff] }
  0x8b   :  { %v2871_v37 = vld [vmem:[#allocation2 + $0x42] sm:$0xff]  ;;  %v2909_v47 = vld [vmem:[#allocation2 + $0x112] sm:$0xff]  ;;  %4616 = vst [vmem:[#allocation12_spill] sm:$0xff] %v2929_v54 }
  0x8c   :  { %v2905_v46 = vld [vmem:[#allocation2 + $0x20] sm:$0xff]  ;;  %4613 = vst [vmem:[#allocation9_spill] sm:$0xff] %v2909_v47  ;;  %v2981_v7 = vld [vmem:[#allocation2 + $0x110] sm:$0xff] }
  0x8d   :  { %4612 = vst [vmem:[#allocation8_spill] sm:$0xff] %v2905_v46  ;;  %v2935_v55 = vld [vmem:[#allocation2 + $0x40] sm:$0xff] }
  0x8e   :  { %v157_v16 = vpop.permute.xlu1 %156  ;;  %4617 = vst [vmem:[#allocation13_spill] sm:$0xff] %v2935_v55 }
  0x8f   :  { %v194_v18 = vmax.f32 %v2625_v32, %v157_v16  ;;  %v155_v19 = vpop.permute.xlu0 %154 }
  0x90   :  { %v193_v21 = vmax.f32 %v2629_v33, %v155_v19  ;;  %v2855_v33 = vld [vmem:[#allocation2 + $0x22] sm:$0xff] }
  0x91   :  { %212 = vst.msk [vmem:[#allocation2 + $0xd1] sm:$0xff] %vm201_vm3, %v194_v18  ;;  %397 = vrot.lane.b32.xlu1 %v2811_v17, %s2466_s6  ;;  %v2820_v22 = vld [vmem:[#allocation2 + $0x71] sm:$0xff] }
  0x92   :  { %211 = vst.msk [vmem:[#allocation2 + $0xc1] sm:$0xff] %vm201_vm3, %v193_v21  ;;  %389 = vrot.lane.b32.xlu0 %v2814_v20, %s2466_s6  ;;  %393 = vrot.lane.b32.xlu2 %v2820_v22, %s2466_s6  ;;  %v2879_v39 = vld [vmem:[#allocation2 + $0x72] sm:$0xff] }
  0x93   :  { %v2949_v59 = vld [vmem:[#allocation2 + $0x70] sm:$0xff] }
  0x96   :  { %v163_v23 = vpop.permute.xlu1 %162 }
  0x97   :  { %v197_v25 = vmax.f32 %v2655_v41, %v163_v23  ;;  %v161_v26 = vpop.permute.xlu0 %160  ;;  %v2885_v41 = vld [vmem:[#allocation2 + $0xb2] sm:$0xff]  ;;  %v3021_v23 = vld [vmem:[#allocation2 + $0x81] sm:$0xff] }
  0x98   :  { %v196_v27 = vmax.f32 %v2659_v42, %v161_v26  ;;  %v2831_v28 = vld [vmem:[#allocation2 + $0xd1] sm:$0xff] }
  0x99   :  { %215 = vst.msk [vmem:[#allocation2 + $0x101] sm:$0xff] %vm201_vm3, %v197_v25  ;;  %403 = vrot.lane.b32.xlu1 %v2827_v24, %s2466_s6  ;;  %v2836_v29 = vld [vmem:[#allocation2 + $0xc1] sm:$0xff]  ;;  %v2881_v40 = vld [vmem:[#allocation2 + $0xd2] sm:$0xff] }
  0x9a   :  { %214 = vst.msk [vmem:[#allocation2 + $0xf1] sm:$0xff] %vm201_vm3, %v196_v27  ;;  %401 = vrot.lane.b32.xlu0 %v2831_v28, %s2466_s6  ;;  %399 = vrot.lane.b32.xlu2 %v2836_v29, %s2466_s6  ;;  %v2891_v42 = vld [vmem:[#allocation2 + $0xc2] sm:$0xff]  ;;  %v2945_v58 = vld [vmem:[#allocation2 + $0xd0] sm:$0xff] }
  0x9b   :  { %4608 = vst [vmem:[#allocation4_spill] sm:$0xff] %v2881_v40  ;;  %v2965_v0 = vld [vmem:[#allocation2 + $0xc0] sm:$0xff] }
  0x9e   :  { %v2953_v61 = vpop.permute.xlu1 %379 }
  0x9f   :  { %v167_v48 = vpop.permute.xlu0 %166  ;;  %4619 = vst [vmem:[#allocation15_spill] sm:$0xff] %v2953_v61 }
  0xa0   :  { %v2845_v31 = vld [vmem:[#allocation2 + $0x101] sm:$0xff]  ;;  %v199_v50 = vmax.f32 %v2696_v49, %v167_v48 }
  0xa1   :  { %409 = vrot.lane.b32.xlu1 %v2843_v30, %s2466_s6  ;;  %v2849_v32 = vld [vmem:[#allocation2 + $0xf1] sm:$0xff]  ;;  %v2893_v43 = vld [vmem:[#allocation2 + $0x102] sm:$0xff] }
  0xa2   :  { %407 = vrot.lane.b32.xlu0 %v2845_v31, %s2466_s6  ;;  %405 = vrot.lane.b32.xlu2 %v2849_v32, %s2466_s6  ;;  %4609 = vst [vmem:[#allocation5_spill] sm:$0xff] %v2893_v43  ;;  %v2903_v45 = vld [vmem:[#allocation2 + $0xf2] sm:$0xff]  ;;  %v2931_v49 = vld [vmem:[#allocation2 + $0x80] sm:$0xff] }
  0xa3   :  { %4611 = vst [vmem:[#allocation7_spill] sm:$0xff] %v2903_v45  ;;  %v2961_v63 = vld [vmem:[#allocation2 + $0x100] sm:$0xff]  ;;  %v2979_v4 = vld [vmem:[#allocation2 + $0xf0] sm:$0xff] }
  0xa4   :  { %217 = vst.msk [vmem:[#allocation2 + $0x121] sm:$0xff] %vm201_vm3, %v199_v50 }
  0xa5   :  { %4621 = vst [vmem:[#allocation17_spill] sm:$0xff] %v2979_v4 }
  0xa6   :  { %v2973_v2 = vpop.permute.xlu1 %459 }
  0xa7   :  { %v2987_v8 = vpop.permute.xlu0 %395 }
  0xa9   :  { %447 = vrot.lane.b32.xlu1 %v2855_v33, %s2467_s11 }
  0xaa   :  { %445 = vrot.lane.b32.xlu0 %v2859_v34, %s2467_s11  ;;  %449 = vrot.lane.b32.xlu2 %v2861_v35, %s2467_s11 }
  0xb1   :  { %453 = vrot.lane.b32.xlu1 %v2867_v36, %s2467_s11 }
  0xb2   :  { %451 = vrot.lane.b32.xlu0 %v2871_v37, %s2467_s11  ;;  %455 = vrot.lane.b32.xlu2 %v2873_v38, %s2467_s11 }
  0xb9   :  { %465 = vrot.lane.b32.xlu1 %v2881_v40, %s2467_s11 }
  0xba   :  { %457 = vrot.lane.b32.xlu0 %v2879_v39, %s2467_s11  ;;  %461 = vrot.lane.b32.xlu2 %v2885_v41, %s2467_s11 }
  0xc1   :  { %471 = vrot.lane.b32.xlu1 %v2893_v43, %s2467_s11 }
  0xc2   :  { %463 = vrot.lane.b32.xlu0 %v2891_v42, %s2467_s11  ;;  %467 = vrot.lane.b32.xlu2 %v2897_v44, %s2467_s11 }
  0xc9   :  { %509 = vrot.lane.b32.xlu1 %v2905_v46, %s2468_s0 }
  0xca   :  { %469 = vrot.lane.b32.xlu0 %v2903_v45, %s2467_s11  ;;  %473 = vrot.lane.b32.xlu2 %v2909_v47, %s2467_s11 }
  0xd1   :  { %515 = vrot.lane.b32.xlu1 %v2916_v51, %s2468_s0 }
  0xd2   :  { %507 = vrot.lane.b32.xlu0 %v2921_v52, %s2468_s0  ;;  %511 = vrot.lane.b32.xlu2 %v2923_v53, %s2468_s0 }
  0xd9   :  { %521 = vrot.lane.b32.xlu1 %v2931_v49, %s2468_s0 }
  0xda   :  { %513 = vrot.lane.b32.xlu0 %v2935_v55, %s2468_s0  ;;  %517 = vrot.lane.b32.xlu2 %v2937_v56, %s2468_s0 }
  0xdc   :  { %v2943_v57 = vpop.permute.xlu2 %381 }
  0xdd   :  { %4618 = vst [vmem:[#allocation14_spill] sm:$0xff] %v2943_v57 }
  0xe1   :  { %527 = vrot.lane.b32.xlu1 %v2945_v58, %s2468_s0 }
  0xe2   :  { %519 = vrot.lane.b32.xlu0 %v2949_v59, %s2468_s0  ;;  %523 = vrot.lane.b32.xlu2 %v2951_v60, %s2468_s0 }
  0xe4   :  { %v2959_v62 = vpop.permute.xlu2 %387 }
  0xe5   :  { %4620 = vst [vmem:[#allocation16_spill] sm:$0xff] %v2959_v62 }
  0xe9   :  { %533 = vrot.lane.b32.xlu1 %v2961_v63, %s2468_s0 }
  0xea   :  { %525 = vrot.lane.b32.xlu0 %v2965_v0, %s2468_s0  ;;  %529 = vrot.lane.b32.xlu2 %v2967_v1, %s2468_s0 }
  0xec   :  { %v2975_v3 = vpop.permute.xlu2 %393 }
  0xf1   :  { %571 = vrot.lane.b32.xlu1 %v2788_v6, %s2469_s26  ;;  %v2995_v6 = vld [vmem:[#allocation2 + $0x120] sm:$0xff] }
  0xf2   :  { %531 = vrot.lane.b32.xlu0 %v2979_v4, %s2468_s0  ;;  %535 = vrot.lane.b32.xlu2 %v2981_v7, %s2468_s0 }
  0xf3   :  { %v2989_v9 = vpop.permute.xlu1 %385 }
  0xf4   :  { %4622 = vst [vmem:[#allocation18_spill] sm:$0xff] %v2989_v9  ;;  %v2991_v11 = vpop.permute.xlu2 %399 }
  0xf9   :  { %577 = vrot.lane.b32.xlu1 %v2799_v14, %s2469_s26 }
  0xfa   :  { %573 = vrot.lane.b32.xlu2 %v2804_v15, %s2469_s26  ;;  %537 = vrot.lane.b32.xlu0 %v2995_v6, %s2468_s0  ;;  %s2476_s0 = smov 48  }
  0xfb   :  { %v3001_v12 = vpop.permute.xlu1 %391 }
  0xfc   :  { %v3003_v13 = vpop.permute.xlu2 %405  ;;  %v3005_v16 = vpop.permute.xlu0 %383 }
  0xfd   :  { %4623 = vst [vmem:[#allocation19_spill] sm:$0xff] %v3003_v13 }
  0xfe   :  { %4624 = vst [vmem:[#allocation20_spill] sm:$0xff] %v3005_v16 }
 0x101   :  { %583 = vrot.lane.b32.xlu1 %v2820_v22, %s2469_s26 }
 0x102   :  { %579 = vrot.lane.b32.xlu2 %v2814_v20, %s2469_s26  ;;  %575 = vrot.lane.b32.xlu0 %v2783_v5, %s2469_s26 }
 0x103   :  { %v3013_v18 = vpop.permute.xlu1 %397 }
 0x104   :  { %v3015_v19 = vpop.permute.xlu2 %449  ;;  %v3017_v21 = vpop.permute.xlu0 %389 }
 0x105   :  { %4625 = vst [vmem:[#allocation21_spill] sm:$0xff] %v3015_v19  ;;  %v3045_v19 = vld [vmem:[#allocation2 + $0x121] sm:$0xff] }
 0x109   :  { %589 = vrot.lane.b32.xlu1 %v2836_v29, %s2469_s26 }
 0x10a   :  { %585 = vrot.lane.b32.xlu2 %v3021_v23, %s2469_s26  ;;  %581 = vrot.lane.b32.xlu0 %v2795_v10, %s2469_s26 }
 0x10b   :  { %v3027_v25 = vpop.permute.xlu1 %403 }
 0x10c   :  { %v3029_v26 = vpop.permute.xlu2 %455  ;;  %v3031_v27 = vpop.permute.xlu0 %401 }
 0x111   :  { %595 = vrot.lane.b32.xlu1 %v2849_v32, %s2469_s26 }
 0x112   :  { %591 = vrot.lane.b32.xlu2 %v2831_v28, %s2469_s26  ;;  %587 = vrot.lane.b32.xlu0 %v2811_v17, %s2469_s26 }
 0x113   :  { %v3039_v48 = vpop.permute.xlu1 %409 }
 0x114   :  { %v3041_v50 = vpop.permute.xlu2 %461  ;;  %v3043_v62 = vpop.permute.xlu0 %407 }
 0x119   :  { %601 = vrot.lane.b32.xlu1 %v3045_v19, %s2469_s26 }
 0x11a   :  { %597 = vrot.lane.b32.xlu2 %v2845_v31, %s2469_s26  ;;  %593 = vrot.lane.b32.xlu0 %v2827_v24, %s2469_s26 }
 0x11b   :  { %v3053_v9 = vpop.permute.xlu1 %447 }
 0x11c   :  { %4626 = vst [vmem:[#allocation22_spill] sm:$0xff] %v3053_v9  ;;  %v3055_v17 = vpop.permute.xlu2 %467  ;;  %v3057_v16 = vpop.permute.xlu0 %445 }
 0x11d   :  { %4627 = vst [vmem:[#allocation23_spill] sm:$0xff] %v3057_v16 }
 0x121   :  { %639 = vrot.lane.b32.xlu1 %v2861_v35, %s2470_s12 }
 0x122   :  { %635 = vrot.lane.b32.xlu2 %v2859_v34, %s2470_s12  ;;  %599 = vrot.lane.b32.xlu0 %v2843_v30, %s2469_s26 }
 0x123   :  { %v3065_v52 = vpop.permute.xlu1 %453 }
 0x124   :  { %v3067_v57 = vpop.permute.xlu2 %473  ;;  %v3069_v54 = vpop.permute.xlu0 %451 }
 0x125   :  { %4628 = vst [vmem:[#allocation24_spill] sm:$0xff] %v3069_v54 }
 0x129   :  { %645 = vrot.lane.b32.xlu1 %v2873_v38, %s2470_s12 }
 0x12a   :  { %641 = vrot.lane.b32.xlu2 %v2871_v37, %s2470_s12  ;;  %637 = vrot.lane.b32.xlu0 %v2855_v33, %s2470_s12 }
 0x12b   :  { %v3077_v9 = vpop.permute.xlu1 %465 }
 0x12c   :  { %v3079_v34 = vpop.permute.xlu2 %511  ;;  %v3081_v16 = vpop.permute.xlu0 %457 }
 0x12d   :  { %4629 = vst [vmem:[#allocation25_spill] sm:$0xff] %v3079_v34  ;;  %v3097_v34 = vld [vmem:[#allocation2 + $0x82] sm:$0xff] }
 0x12e   :  { %4632 = vst [vmem:[#allocation28_spill] sm:$0xff] %v3097_v34 }
 0x131   :  { %651 = vrot.lane.b32.xlu1 %v2885_v41, %s2470_s12 }
 0x132   :  { %647 = vrot.lane.b32.xlu2 %v2879_v39, %s2470_s12  ;;  %643 = vrot.lane.b32.xlu0 %v2867_v36, %s2470_s12 }
 0x133   :  { %v3089_v54 = vpop.permute.xlu1 %471 }
 0x134   :  { %4630 = vst [vmem:[#allocation26_spill] sm:$0xff] %v3089_v54  ;;  %v3091_v61 = vpop.permute.xlu2 %517  ;;  %v3093_v13 = vpop.permute.xlu0 %463 }
 0x135   :  { %4631 = vst [vmem:[#allocation27_spill] sm:$0xff] %v3093_v13 }
 0x139   :  { %657 = vrot.lane.b32.xlu1 %v2897_v44, %s2470_s12 }
 0x13a   :  { %653 = vrot.lane.b32.xlu2 %v2891_v42, %s2470_s12  ;;  %649 = vrot.lane.b32.xlu0 %v3097_v34, %s2470_s12 }
 0x13b   :  { %v3103_v41 = vpop.permute.xlu1 %509 }
 0x13c   :  { %4633 = vst [vmem:[#allocation29_spill] sm:$0xff] %v3103_v41  ;;  %v3105_v38 = vpop.permute.xlu2 %523  ;;  %v3107_v54 = vpop.permute.xlu0 %469  ;;  %v3121_v41 = vld [vmem:[#allocation2 + $0x122] sm:$0xff] }
 0x13d   :  { %4634 = vst [vmem:[#allocation30_spill] sm:$0xff] %v3107_v54 }
 0x13e   :  { %4637 = vst [vmem:[#allocation33_spill] sm:$0xff] %v3121_v41 }
 0x141   :  { %663 = vrot.lane.b32.xlu1 %v2909_v47, %s2470_s12 }
 0x142   :  { %659 = vrot.lane.b32.xlu2 %v2903_v45, %s2470_s12  ;;  %655 = vrot.lane.b32.xlu0 %v2881_v40, %s2470_s12 }
 0x143   :  { %v3115_v44 = vpop.permute.xlu1 %515 }
 0x144   :  { %4635 = vst [vmem:[#allocation31_spill] sm:$0xff] %v3115_v44  ;;  %v3117_v13 = vpop.permute.xlu2 %529  ;;  %v3119_v34 = vpop.permute.xlu0 %507 }
 0x145   :  { %4636 = vst [vmem:[#allocation32_spill] sm:$0xff] %v3119_v34 }
 0x149   :  { %701 = vrot.lane.b32.xlu1 %v2923_v53, %s2471_s13 }
 0x14a   :  { %665 = vrot.lane.b32.xlu2 %v3121_v41, %s2470_s12  ;;  %661 = vrot.lane.b32.xlu0 %v2893_v43, %s2470_s12  ;;  %v322_v41 = vld [vmem:[#allocation2 + $0x90] sm:$0xff] }
 0x14b   :  { %v3129_v47 = vpop.permute.xlu1 %521 }
 0x14c   :  { %v3131_v40 = vpop.permute.xlu2 %535  ;;  %v3133_v44 = vpop.permute.xlu0 %513 }
 0x14d   :  { %4638 = vst [vmem:[#allocation34_spill] sm:$0xff] %v3133_v44 }
 0x151   :  { %707 = vrot.lane.b32.xlu1 %v2937_v56, %s2471_s13 }
 0x152   :  { %703 = vrot.lane.b32.xlu2 %v2935_v55, %s2471_s13  ;;  %699 = vrot.lane.b32.xlu0 %v2905_v46, %s2471_s13 }
 0x153   :  { %v3141_v53 = vpop.permute.xlu1 %527 }
 0x154   :  { %v3143_v34 = vpop.permute.xlu2 %573  ;;  %v520_v43 = vpop.permute.xlu0 %519 }
 0x155   :  { %4639 = vst [vmem:[#allocation35_spill] sm:$0xff] %v3143_v34 }
 0x159   :  { %713 = vrot.lane.b32.xlu1 %v322_v41, %s2471_s13 }
 0x15a   :  { %709 = vrot.lane.b32.xlu2 %v2949_v59, %s2471_s13  ;;  %705 = vrot.lane.b32.xlu0 %v2916_v51, %s2471_s13 }
 0x15b   :  { %v3150_v44 = vpop.permute.xlu1 %533 }
 0x15c   :  { %4640 = vst [vmem:[#allocation36_spill] sm:$0xff] %v3150_v44  ;;  %v3152_v55 = vpop.permute.xlu2 %579  ;;  %v526_v54 = vpop.permute.xlu0 %525 }
 0x15d   :  { %4641 = vst [vmem:[#allocation37_spill] sm:$0xff] %v3152_v55 }
 0x161   :  { %719 = vrot.lane.b32.xlu1 %v2967_v1, %s2471_s13 }
 0x162   :  { %715 = vrot.lane.b32.xlu2 %v2965_v0, %s2471_s13  ;;  %711 = vrot.lane.b32.xlu0 %v2931_v49, %s2471_s13 }
 0x163   :  { %v3160_v41 = vpop.permute.xlu1 %571 }
 0x164   :  { %4642 = vst [vmem:[#allocation38_spill] sm:$0xff] %v3160_v41  ;;  %v3162_v46 = vpop.permute.xlu2 %585  ;;  %v3164_v34 = vpop.permute.xlu0 %531 }
 0x169   :  { %725 = vrot.lane.b32.xlu1 %v2981_v7, %s2471_s13 }
 0x16a   :  { %721 = vrot.lane.b32.xlu2 %v2979_v4, %s2471_s13  ;;  %717 = vrot.lane.b32.xlu0 %v2945_v58, %s2471_s13 }
 0x16b   :  { %v3172_v55 = vpop.permute.xlu1 %577 }
 0x16c   :  { %4643 = vst [vmem:[#allocation39_spill] sm:$0xff] %v3172_v55  ;;  %v3174_v44 = vpop.permute.xlu2 %591  ;;  %v3176_v49 = vpop.permute.xlu0 %537  ;;  %v330_v55 = vld [vmem:[#allocation2 + $0x130] sm:$0xff] }
 0x16d   :  { %4644 = vst [vmem:[#allocation40_spill] sm:$0xff] %v3174_v44 }
 0x171   :  { %763 = vrot.lane.b32.xlu1 %v2804_v15, %s2472_s14 }
 0x172   :  { %727 = vrot.lane.b32.xlu2 %v2995_v6, %s2471_s13  ;;  %723 = vrot.lane.b32.xlu0 %v2961_v63, %s2471_s13 }
 0x173   :  { %v584_v41 = vpop.permute.xlu1 %583 }
 0x174   :  { %v3184_v45 = vpop.permute.xlu2 %597  ;;  %v3186_v4 = vpop.permute.xlu0 %575 }
 0x175   :  { %4645 = vst [vmem:[#allocation41_spill] sm:$0xff] %v3184_v45 }
 0x176   :  { %4646 = vst [vmem:[#allocation42_spill] sm:$0xff] %v3186_v4 }
 0x179   :  { %769 = vrot.lane.b32.xlu1 %v2814_v20, %s2472_s14 }
 0x17a   :  { %765 = vrot.lane.b32.xlu2 %v2783_v5, %s2472_s14  ;;  %729 = vrot.lane.b32.xlu0 %v330_v55, %s2471_s13  ;;  %v338_v5 = vld [vmem:[#allocation2 + $0x91] sm:$0xff]  ;;  %v881_v55 = vsel %vm201_vm3, %v2937_v56, %v3001_v12 }
 0x17b   :  { %v590_v15 = vpop.permute.xlu1 %589 }
 0x17c   :  { %v3193_v44 = vpop.permute.xlu2 %635  ;;  %v582_v6 = vpop.permute.xlu0 %581 }
 0x181   :  { %775 = vrot.lane.b32.xlu1 %v3021_v23, %s2472_s14  ;;  %v897_v23 = vsel %vm20_vm0, %v881_v55, %v3029_v26  ;;  %v884_v26 = vsel %vm201_vm3, %v2951_v60, %v3013_v18  ;;  %v346_v18 = vld [vmem:[#allocation2 + $0x131] sm:$0xff] }
 0x182   :  { %771 = vrot.lane.b32.xlu2 %v2795_v10, %s2472_s14  ;;  %767 = vrot.lane.b32.xlu0 %v2799_v14, %s2472_s14  ;;  %v914_v10 = vsel %vm907_vm4, %v897_v23, %v520_v43 }
 0x183   :  { %v596_v4 = vpop.permute.xlu1 %595 }
 0x184   :  { %v3201_v20 = vpop.permute.xlu2 %641  ;;  %v588_v45 = vpop.permute.xlu0 %587 }
 0x185   :  { %4647 = vst [vmem:[#allocation43_spill] sm:$0xff] %v3201_v20  ;;  %v931_v20 = vsel %vm924_vm5, %v914_v10, %v584_v41 }
 0x189   :  { %781 = vrot.lane.b32.xlu1 %v2831_v28, %s2472_s14 }
 0x18a   :  { %777 = vrot.lane.b32.xlu2 %v338_v5, %s2472_s14  ;;  %773 = vrot.lane.b32.xlu0 %v2820_v22, %s2472_s14  ;;  %v900_v22 = vsel %vm20_vm0, %v884_v26, %v3041_v50 }
 0x18b   :  { %v602_v14 = vpop.permute.xlu1 %601  ;;  %v917_v43 = vsel %vm907_vm4, %v900_v22, %v526_v54  ;;  %v4650_v22 = vld [vmem:[#allocation28_spill] sm:$0xff] }
 0x18c   :  { %v648_v56 = vpop.permute.xlu2 %647  ;;  %v594_v12 = vpop.permute.xlu0 %593 }
 0x18d   :  { %v3216_v28 = vsel %vm941_vm6, %v931_v20, %v648_v56  ;;  %v934_v20 = vsel %vm924_vm5, %v917_v43, %v590_v15  ;;  %v4649_v56 = vld [vmem:[#allocation27_spill] sm:$0xff] }
 0x191   :  { %787 = vrot.lane.b32.xlu1 %v2845_v31, %s2472_s14 }
 0x192   :  { %783 = vrot.lane.b32.xlu2 %v2827_v24, %s2472_s14  ;;  %779 = vrot.lane.b32.xlu0 %v2836_v29, %s2472_s14  ;;  %v880_v24 = vsel %vm201_vm3, %v2916_v51, %v3017_v21  ;;  %v887_v29 = vsel %vm201_vm3, %v2967_v1, %v3027_v25  ;;  %v226_v51 = vld [vmem:[#allocation2 + $0xa0] sm:$0xff] }
 0x193   :  { %v3230_v41 = vpop.permute.xlu1 %639  ;;  %v896_v54 = vsel %vm20_vm0, %v880_v24, %v3065_v52  ;;  %v903_v50 = vsel %vm20_vm0, %v887_v29, %v3055_v17  ;;  %v354_v24 = vld [vmem:[#allocation2 + $0x92] sm:$0xff]  ;;  %v4653_v29 = vld [vmem:[#allocation19_spill] sm:$0xff] }
 0x194   :  { %v654_v5 = vpop.permute.xlu2 %653  ;;  %v3233_v60 = vpop.permute.xlu0 %599  ;;  %v913_v15 = vsel %vm907_vm4, %v896_v54, %v3091_v61  ;;  %v920_v1 = vsel %vm907_vm4, %v903_v50, %v3164_v34  ;;  %v890_v34 = vsel %vm201_vm3, %v2981_v7, %v3039_v48  ;;  %v4654_v54 = vld [vmem:[#allocation17_spill] sm:$0xff]  ;;  %v4656_v50 = vld [vmem:[#allocation30_spill] sm:$0xff] }
 0x195   :  { %v3236_v31 = vsel %vm941_vm6, %v934_v20, %v654_v5  ;;  %v930_v52 = vsel %vm924_vm5, %v913_v15, %v582_v6  ;;  %v937_v25 = vsel %vm924_vm5, %v920_v1, %v596_v4  ;;  %v906_v4 = vsel %vm20_vm0, %v890_v34, %v3067_v57  ;;  %v4658_v1 = vld [vmem:[#allocation36_spill] sm:$0xff] }
 0x196   :  { %v923_v7 = vsel %vm907_vm4, %v906_v4, %v3176_v49  ;;  %v4660_v4 = vld [vmem:[#allocation33_spill] sm:$0xff] }
 0x199   :  { %793 = vrot.lane.b32.xlu1 %v346_v18, %s2472_s14 }
 0x19a   :  { %789 = vrot.lane.b32.xlu2 %v2843_v30, %s2472_s14  ;;  %785 = vrot.lane.b32.xlu0 %v2849_v32, %s2472_s14  ;;  %v883_v32 = vsel %vm201_vm3, %v226_v51, %v2987_v8  ;;  %v4657_v51 = vld [vmem:[#allocation4_spill] sm:$0xff] }
 0x19b   :  { %v646_v21 = vpop.permute.xlu1 %645  ;;  %v899_v6 = vsel %vm20_vm0, %v883_v32, %v2973_v2 }
 0x19c   :  { %v660_v55 = vpop.permute.xlu2 %659  ;;  %v3260_v17 = vsel %vm941_vm6, %v930_v52, %v646_v21  ;;  %v3262_v61 = vpop.permute.xlu0 %637  ;;  %v916_v23 = vsel %vm907_vm4, %v899_v6, %v3105_v38 }
 0x19d   :  { %v3265_v30 = vsel %vm941_vm6, %v937_v25, %v660_v55  ;;  %v933_v2 = vsel %vm924_vm5, %v916_v23, %v588_v45  ;;  %v882_v45 = vsel %vm201_vm3, %v2949_v59, %v2975_v3  ;;  %v4659_v25 = vld [vmem:[#allocation41_spill] sm:$0xff] }
 0x19e   :  { %v898_v49 = vsel %vm20_vm0, %v882_v45, %v3081_v16  ;;  %v4661_v23 = vld [vmem:[#allocation5_spill] sm:$0xff] }
 0x19f   :  { %v362_v45 = vld [vmem:[#allocation2 + $0x132] sm:$0xff] }
 0x1a1   :  { %831 = vrot.lane.b32.xlu1 %v2871_v37, %s2473_s15  ;;  %v940_v37 = vsel %vm924_vm5, %v923_v7, %v602_v14  ;;  %v4662_v7 = vld [vmem:[#allocation6_spill] sm:$0xff] }
 0x1a2   :  { %827 = vrot.lane.b32.xlu2 %v2855_v33, %s2473_s15  ;;  %791 = vrot.lane.b32.xlu0 %v3045_v19, %s2472_s14  ;;  %v886_v33 = vsel %vm201_vm3, %v2945_v58, %v3031_v27  ;;  %v915_v58 = vsel %vm907_vm4, %v898_v49, %v3129_v47  ;;  %v885_v47 = vsel %vm201_vm3, %v2965_v0, %v2991_v11  ;;  %v4648_v27 = vld [vmem:[#allocation26_spill] sm:$0xff] }
 0x1a3   :  { %v652_v8 = vpop.permute.xlu1 %651  ;;  %v902_v19 = vsel %vm20_vm0, %v886_v33, %v3077_v9  ;;  %v1010_v33 = vld [vmem:[%s4560_s1 + $0x8] sm:$0xff] }
 0x1a4   :  { %v666_v48 = vpop.permute.xlu2 %665  ;;  %v3289_v57 = vsel %vm941_vm6, %v933_v2, %v652_v8  ;;  %v3291_v10 = vpop.permute.xlu0 %643  ;;  %v919_v14 = vsel %vm907_vm4, %v902_v19, %v3117_v13  ;;  %1035 = vst [vmem:[#allocation1 + $0x1] ss:$2 sm:$0xff] %v1010_v33  ;;  %v4663_v19 = vld [vmem:[#allocation9_spill] sm:$0xff] }
 0x1a5   :  { %v3294_v38 = vsel %vm941_vm6, %v940_v37, %v666_v48  ;;  %v936_v59 = vsel %vm924_vm5, %v919_v14, %v594_v12  ;;  %v901_v12 = vsel %vm20_vm0, %v885_v47, %v4649_v56  ;;  %v1009_v48 = vld [vmem:[%s4560_s1] sm:$0xff]  ;;  %v1011_v56 = vld [vmem:[%s4560_s1 + $0x10] sm:$0xff] }
 0x1a6   :  { %1033 = vst [vmem:[#allocation1] ss:$2 sm:$0xff] %v1009_v48  ;;  %v1013_v47 = vld [vmem:[%s4560_s1 + $0x20] sm:$0xff]  ;;  %v4664_v48 = vld [vmem:[#allocation15_spill] sm:$0xff] }
 0x1a7   :  { %1041 = vst [vmem:[#allocation1 + $0x20] ss:$2 sm:$0xff] %v1013_v47 }
 0x1a8   :  { %1037 = vst [vmem:[#allocation1 + $0x10] ss:$2 sm:$0xff] %v1011_v56 }
 0x1a9   :  { %837 = vrot.lane.b32.xlu1 %v2879_v39, %s2473_s15  ;;  %v932_v39 = vsel %vm924_vm5, %v915_v58, %v3162_v46 }
 0x1aa   :  { %833 = vrot.lane.b32.xlu2 %v2867_v36, %s2473_s15  ;;  %829 = vrot.lane.b32.xlu0 %v2861_v35, %s2473_s15  ;;  %v889_v35 = vsel %vm201_vm3, %v2961_v63, %v3043_v62  ;;  %v4651_v62 = vld [vmem:[#allocation3_spill] sm:$0xff]  ;;  %v918_v63 = vsel %vm907_vm4, %v901_v12, %v3141_v53  ;;  %v888_v53 = vsel %vm201_vm3, %v4654_v54, %v4653_v29  ;;  %v1012_v12 = vld [vmem:[%s4560_s1 + $0x18] sm:$0xff] }
 0x1ab   :  { %v658_v3 = vpop.permute.xlu1 %657  ;;  %v905_v46 = vsel %vm20_vm0, %v889_v35, %v4648_v27  ;;  %v904_v15 = vsel %vm20_vm0, %v888_v53, %v4656_v50  ;;  %v1016_v35 = vld [vmem:[%s4560_s1 + $0x38] sm:$0xff]  ;;  %v1014_v27 = vld [vmem:[%s4560_s1 + $0x28] sm:$0xff]  ;;  %1039 = vst [vmem:[#allocation1 + $0x11] ss:$2 sm:$0xff] %v1012_v12 }
 0x1ac   :  { %v3319_v9 = vpop.permute.xlu2 %703  ;;  %v3322_v16 = vsel %vm941_vm6, %v936_v59, %v658_v3  ;;  %v650_v13 = vpop.permute.xlu0 %649  ;;  %v922_v26 = vsel %vm907_vm4, %v905_v46, %v3131_v40  ;;  %v921_v52 = vsel %vm907_vm4, %v904_v15, %v4658_v1  ;;  %v1017_v59 = vld [vmem:[%s4560_s1 + $0x40] sm:$0xff]  ;;  %1047 = vst [vmem:[#allocation1 + $0x31] ss:$2 sm:$0xff] %v1016_v35 }
 0x1ad   :  { %v3325_v36 = vsel %vm941_vm6, %v932_v39, %v650_v13  ;;  %v939_v0 = vsel %vm924_vm5, %v922_v26, %v3233_v60  ;;  %v4655_v60 = vld [vmem:[#allocation7_spill] sm:$0xff]  ;;  %v938_v55 = vsel %vm924_vm5, %v921_v52, %v4659_v25  ;;  %v1048_v3 = vld.sshfl [vmem:[#allocation1] sm:$0xff pattern:$0x75316420]  ;;  %v1015_v13 = vld [vmem:[%s4560_s1 + $0x30] sm:$0xff] }
 0x1ae   :  { %v1049_v39 = vld.sshfl [vmem:[#allocation1 + $0x8] sm:$0xff pattern:$0x75316420]  ;;  %1045 = vst [vmem:[#allocation1 + $0x30] ss:$2 sm:$0xff] %v1015_v13  ;;  %v4666_v13 = vld [vmem:[#allocation32_spill] sm:$0xff] }
 0x1af   :  { %1056 = vst [vmem:[#allocation1] ss:$2 sm:$0xff] %v1017_v59  ;;  %v4667_v35 = vld [vmem:[#allocation38_spill] sm:$0xff] }
 0x1b0   :  { %1043 = vst [vmem:[#allocation1 + $0x21] ss:$2 sm:$0xff] %v1014_v27 }
 0x1b1   :  { %843 = vrot.lane.b32.xlu1 %v2891_v42, %s2473_s15  ;;  %v4652_v42 = vld [vmem:[#allocation40_spill] sm:$0xff] }
 0x1b2   :  { %839 = vrot.lane.b32.xlu2 %v4650_v22, %s2473_s15  ;;  %835 = vrot.lane.b32.xlu0 %v4651_v62, %s2473_s15  ;;  %v935_v43 = vsel %vm924_vm5, %v918_v63, %v4652_v42  ;;  %v1050_v54 = vld.sshfl [vmem:[#allocation1 + $0x10] sm:$0xff pattern:$0x75316420]  ;;  %v1051_v53 = vld.sshfl [vmem:[#allocation1 + $0x18] sm:$0xff pattern:$0x75316420] }
 0x1b3   :  { %v664_v11 = vpop.permute.xlu1 %663 }
 0x1b4   :  { %v3351_v20 = vpop.permute.xlu2 %709  ;;  %v3354_v40 = vsel %vm941_vm6, %v939_v0, %v664_v11  ;;  %v656_v5 = vpop.permute.xlu0 %655 }
 0x1b5   :  { %v3357_v18 = vsel %vm941_vm6, %v935_v43, %v656_v5  ;;  %v1054_v0 = vld.sshfl [vmem:[#allocation1 + $0x30] sm:$0xff pattern:$0x75316420]  ;;  %v1055_v11 = vld.sshfl [vmem:[#allocation1 + $0x38] sm:$0xff pattern:$0x75316420]  ;;  %v964_v12 = vsel %vm958_vm8, %v3260_v17, %v3351_v20 }
 0x1b6   :  { %v1057_v62 = vld.sshfl [vmem:[#allocation1] sm:$0xff pattern:$0x75316420]  ;;  %v1058_v63 = vld.sshfl [vmem:[#allocation1 + $0x8] sm:$0xff pattern:$0x75316420] }
 0x1b7   :  { %2379 = vmatpush.msk.msra.mxu0 %vm1116_vm7, %v1057_v62  ;;  %2396 = vmatpush.msk.msra.mxu1 %vm1116_vm7, %v1058_v63  ;;  %v1052_v42 = vld.sshfl [vmem:[#allocation1 + $0x20] sm:$0xff pattern:$0x75316420]  ;;  %v1053_v43 = vld.sshfl [vmem:[#allocation1 + $0x28] sm:$0xff pattern:$0x75316420] }
 0x1b8   :  { %2429 = vmatpush.msk.msra.mxu3 %vm1116_vm7, %v1057_v62 }
 0x1b9   :  { %849 = vrot.lane.b32.xlu1 %v4655_v60, %s2473_s15  ;;  %1133 = vmatpush.msra.mxu0 %v1054_v0 }
 0x1ba   :  { %845 = vrot.lane.b32.xlu2 %v4657_v51, %s2473_s15  ;;  %841 = vrot.lane.b32.xlu0 %v354_v24, %s2473_s15 }
 0x1bb   :  { %v3371_v21 = vpop.permute.xlu1 %701  ;;  %1198 = vmatpush.msra.mxu1 %v1055_v11  ;;  %2430 = vmatpush.msra.mxu3 %v1054_v0 }
 0x1bc   :  { %v3375_v32 = vpop.permute.xlu2 %715  ;;  %v662_v34 = vpop.permute.xlu0 %661  ;;  %1134 = vmatpush.msra.mxu0 %v1052_v42 }
 0x1bd   :  { %v3378_v6 = vsel %vm941_vm6, %v938_v55, %v662_v34  ;;  %1199 = vmatpush.msra.mxu1 %v1053_v43  ;;  %2431 = vmatpush.msra.mxu3 %v1052_v42  ;;  %v967_v20 = vsel %vm958_vm8, %v3289_v57, %v3375_v32 }
 0x1be   :  { %1135 = vmatpush.msra.mxu0 %v1050_v54 }
 0x1bf   :  { %1200 = vmatpush.msra.mxu1 %v1051_v53  ;;  %2432 = vmatpush.msra.mxu3 %v1050_v54 }
 0x1c0   :  { %1136 = vmatpush.msra.mxu0 %v1048_v3 }
 0x1c1   :  { %855 = vrot.lane.b32.xlu1 %v4660_v4, %s2473_s15  ;;  %1201 = vmatpush.msra.mxu1 %v1049_v39 }
 0x1c2   :  { %851 = vrot.lane.b32.xlu2 %v4661_v23, %s2473_s15  ;;  %847 = vrot.lane.b32.xlu0 %v4662_v7, %s2473_s15 }
 0x1c3   :  { %v3386_v2 = vpop.permute.xlu1 %707  ;;  %2433 = vmatpush.msra.mxu3 %v1048_v3  ;;  %v4665_v3 = vld [vmem:[#allocation12_spill] sm:$0xff] }
 0x1c4   :  { %v3388_v8 = vpop.permute.xlu2 %721  ;;  %v3390_v37 = vpop.permute.xlu0 %699 }
 0x1c5   :  { %2434 = vmatpush.msk.msrb.mxu3 %vm1116_vm7, %v1058_v63 }
 0x1c7   :  { %2435 = vmatpush.msrb.mxu3 %v1055_v11 }
 0x1c9   :  { %2436 = vmatpush.msrb.mxu3 %v1053_v43 }
 0x1ca   :  { %857 = vrot.lane.b32.xlu2 %v362_v45, %s2473_s15  ;;  %853 = vrot.lane.b32.xlu0 %v4663_v19, %s2473_s15 }
 0x1cb   :  { %v714_v49 = vpop.permute.xlu1 %713  ;;  %2437 = vmatpush.msrb.mxu3 %v1051_v53 }
 0x1cc   :  { %v3401_v14 = vpop.permute.xlu2 %727  ;;  %v3403_v58 = vpop.permute.xlu0 %705  ;;  %v966_v50 = vsel %vm958_vm8, %v3325_v36, %v714_v49  ;;  %v218_v36 = vld [vmem:[#allocation2] sm:$0xff] }
 0x1cd   :  { %2438 = vmatpush.msrb.mxu3 %v1049_v39  ;;  %v875_v33 = vsel %vm201_vm3, %v218_v36, %v4664_v48  ;;  %v973_v32 = vsel %vm958_vm8, %v3354_v40, %v3401_v14 }
 0x1ce   :  { %v891_v39 = vsel %vm20_vm0, %v875_v33, %v4665_v3 }
 0x1d3   :  { %v720_v46 = vpop.permute.xlu1 %719 }
 0x1d4   :  { %v3426_v26 = vpop.permute.xlu2 %765  ;;  %v712_v22 = vpop.permute.xlu0 %711  ;;  %v969_v25 = vsel %vm958_vm8, %v3357_v18, %v720_v46 }
 0x1d5   :  { %v965_v23 = vsel %vm958_vm8, %v3216_v28, %v712_v22  ;;  %v908_v28 = vsel %vm907_vm4, %v891_v39, %v4666_v13  ;;  %v4675_v39 = vld [vmem:[#allocation22_spill] sm:$0xff]  ;;  %v4676_v13 = vld [vmem:[#allocation25_spill] sm:$0xff] }
 0x1d6   :  { %v925_v47 = vsel %vm924_vm5, %v908_v28, %v4667_v35  ;;  %v4677_v28 = vld [vmem:[#allocation42_spill] sm:$0xff] }
 0x1db   :  { %v726_v5 = vpop.permute.xlu1 %725 }
 0x1dc   :  { %v3431_v24 = vpop.permute.xlu2 %771  ;;  %v718_v29 = vpop.permute.xlu0 %717  ;;  %v972_v45 = vsel %vm958_vm8, %v3378_v6, %v726_v5  ;;  %v942_v6 = vsel %vm941_vm6, %v925_v47, %v3193_v44 }
 0x1dd   :  { %v959_v27 = vsel %vm958_vm8, %v942_v6, %v3390_v37  ;;  %v968_v46 = vsel %vm958_vm8, %v3236_v31, %v718_v29 }
 0x1e3   :  { %v764_v60 = vpop.permute.xlu1 %763 }
 0x1e4   :  { %v778_v15 = vpop.permute.xlu2 %777  ;;  %v724_v51 = vpop.permute.xlu0 %723  ;;  %v976_v22 = vsel %vm975_vm9, %v959_v27, %v764_v60 }
 0x1e5   :  { %v3437_v1 = vsel %vm975_vm9, %v966_v50, %v778_v15  ;;  %v971_v31 = vsel %vm958_vm8, %v3265_v30, %v724_v51  ;;  %v970_v30 = vsel %vm958_vm8, %v3322_v16, %v3388_v8  ;;  %v4669_v15 = vld [vmem:[#allocation10_spill] sm:$0xff]  ;;  %v4671_v8 = vld [vmem:[#allocation29_spill] sm:$0xff] }
 0x1eb   :  { %v3439_v52 = vpop.permute.xlu1 %769 }
 0x1ec   :  { %v784_v55 = vpop.permute.xlu2 %783  ;;  %v730_v34 = vpop.permute.xlu0 %729 }
 0x1ed   :  { %v3444_v4 = vsel %vm975_vm9, %v969_v25, %v784_v55  ;;  %v974_v5 = vsel %vm958_vm8, %v3294_v38, %v730_v34  ;;  %v4668_v38 = vld [vmem:[#allocation14_spill] sm:$0xff]  ;;  %v4670_v25 = vld [vmem:[#allocation23_spill] sm:$0xff] }
 0x1ee   :  { %v876_v51 = vsel %vm201_vm3, %v4669_v15, %v4668_v38  ;;  %v4672_v34 = vld [vmem:[#allocation35_spill] sm:$0xff]  ;;  %v4685_v38 = vld [vmem:[#allocation13_spill] sm:$0xff] }
 0x1ef   :  { %v892_v16 = vsel %vm20_vm0, %v876_v51, %v4670_v25  ;;  %v4686_v25 = vld [vmem:[#allocation24_spill] sm:$0xff] }
 0x1f0   :  { %v909_v55 = vsel %vm907_vm4, %v892_v16, %v4671_v8 }
 0x1f1   :  { %v926_v36 = vsel %vm924_vm5, %v909_v55, %v4672_v34 }
 0x1f3   :  { %v776_v7 = vpop.permute.xlu1 %775 }
 0x1f4   :  { %v790_v19 = vpop.permute.xlu2 %789  ;;  %v3453_v49 = vsel %vm975_vm9, %v965_v23, %v776_v7  ;;  %v768_v18 = vpop.permute.xlu0 %767  ;;  %v943_v23 = vsel %vm941_vm6, %v926_v36, %v3262_v61 }
 0x1f5   :  { %v3456_v59 = vsel %vm975_vm9, %v972_v45, %v790_v19  ;;  %v960_v14 = vsel %vm958_vm8, %v943_v23, %v3371_v21  ;;  %v4673_v45 = vld [vmem:[#allocation20_spill] sm:$0xff] }
 0x1f6   :  { %v977_v7 = vsel %vm975_vm9, %v960_v14, %v3426_v26  ;;  %v4674_v19 = vld [vmem:[#allocation8_spill] sm:$0xff] }
 0x1f7   :  { %v877_v3 = vsel %vm201_vm3, %v4674_v19, %v4673_v45 }
 0x1f8   :  { %v893_v61 = vsel %vm20_vm0, %v877_v3, %v4675_v39 }
 0x1f9   :  { %v910_v21 = vsel %vm907_vm4, %v893_v61, %v4676_v13 }
 0x1fa   :  { %v927_v26 = vsel %vm924_vm5, %v910_v21, %v4677_v28  ;;  %v1299_v28 = vld [vmem:[#allocation2 + $0x1] sm:$0xff] }
 0x1fb   :  { %v782_v56 = vpop.permute.xlu1 %781  ;;  %v944_v35 = vsel %vm941_vm6, %v927_v26, %v3230_v41  ;;  %1443 = vrot.lane.b32.xlu0 %v1299_v28, %s2467_s11  ;;  %v1315_v26 = vld [vmem:[#allocation2 + $0x2] sm:$0xff] }
 0x1fc   :  { %v828_v62 = vpop.permute.xlu2 %827  ;;  %v3475_v63 = vsel %vm975_vm9, %v968_v46, %v782_v56  ;;  %v774_v44 = vpop.permute.xlu0 %773  ;;  %v961_v6 = vsel %vm958_vm8, %v944_v35, %v3319_v9 }
 0x1fd   :  { %v3478_v0 = vsel %vm975_vm9, %v964_v12, %v774_v44  ;;  %v993_v37 = vsel %vm992_vm10, %v976_v22, %v828_v62  ;;  %v978_v27 = vsel %vm975_vm9, %v961_v6, %v768_v18  ;;  %v4678_v22 = vld [vmem:[#allocation18_spill] sm:$0xff]  ;;  %v4679_v62 = vld [vmem:[#allocation11_spill] sm:$0xff] }
 0x1fe   :  { %2380 = vmatmul.msk.f32.vlgmr.msra.gmra.mxu0 %vm1067_vm11, %v993_v37  ;;  %2397 = vmatmul.msk.f32.vlgmr.msra.gmra.mxu1 %vm1067_vm11, %v993_v37  ;;  %v878_v44 = vsel %vm201_vm3, %v4679_v62, %v4678_v22  ;;  %v4680_v37 = vld [vmem:[#allocation21_spill] sm:$0xff] }
 0x1ff   :  { %v894_v41 = vsel %vm20_vm0, %v878_v44, %v4680_v37 }
 0x203   :  { %v788_v17 = vpop.permute.xlu1 %787 }
 0x204   :  { %v3489_v11 = vsel %vm975_vm9, %v971_v31, %v788_v17  ;;  %v780_v42 = vpop.permute.xlu0 %779  ;;  %v834_v47 = vpop.permute.xlu2 %833  ;;  %v4681_v31 = vld [vmem:[#allocation34_spill] sm:$0xff]  ;;  %v4682_v17 = vld [vmem:[#allocation39_spill] sm:$0xff] }
 0x205   :  { %v3492_v43 = vsel %vm975_vm9, %v967_v20, %v780_v42  ;;  %v911_v9 = vsel %vm907_vm4, %v894_v41, %v4681_v31  ;;  %v4683_v20 = vld [vmem:[#allocation43_spill] sm:$0xff] }
 0x206   :  { %v928_v18 = vsel %vm924_vm5, %v911_v9, %v4682_v17 }
 0x207   :  { %v945_v42 = vsel %vm941_vm6, %v928_v18, %v4683_v20 }
 0x20b   :  { %v794_v29 = vpop.permute.xlu1 %793 }
 0x20c   :  { %v3500_v54 = vsel %vm975_vm9, %v974_v5, %v794_v29  ;;  %v786_v53 = vpop.permute.xlu0 %785  ;;  %v962_v5 = vsel %vm958_vm8, %v945_v42, %v3403_v58  ;;  %v4687_v58 = vld [vmem:[#allocation31_spill] sm:$0xff] }
 0x20d   :  { %v3503_v57 = vsel %vm975_vm9, %v970_v30, %v786_v53  ;;  %v979_v29 = vsel %vm975_vm9, %v962_v5, %v3439_v52  ;;  %v840_v30 = vpop.permute.xlu2 %839  ;;  %v4688_v52 = vld [vmem:[#allocation37_spill] sm:$0xff] }
 0x20e   :  { %v999_v19 = vsel %vm992_vm10, %v3453_v49, %v840_v30 }
 0x213   :  { %v832_v40 = vpop.permute.xlu1 %831 }
 0x214   :  { %v792_v60 = vpop.permute.xlu0 %791  ;;  %v995_v12 = vsel %vm992_vm10, %v978_v27, %v832_v40 }
 0x215   :  { %v990_v50 = vsel %vm975_vm9, %v973_v32, %v792_v60  ;;  %v996_v32 = vsel %vm992_vm10, %v979_v29, %v834_v47  ;;  %v4684_v60 = vld [vmem:[#allocation16_spill] sm:$0xff] }
 0x216   :  { %v879_v15 = vsel %vm201_vm3, %v4685_v38, %v4684_v60 }
 0x217   :  { %v895_v16 = vsel %vm20_vm0, %v879_v15, %v4686_v25 }
 0x218   :  { %v912_v8 = vsel %vm907_vm4, %v895_v16, %v4687_v58 }
 0x219   :  { %v929_v55 = vsel %vm924_vm5, %v912_v8, %v4688_v52 }
 0x21a   :  { %v946_v34 = vsel %vm941_vm6, %v929_v55, %v3291_v10 }
 0x21b   :  { %v838_v46 = vpop.permute.xlu1 %837  ;;  %v963_v36 = vsel %vm958_vm8, %v946_v34, %v3386_v2 }
 0x21c   :  { %v830_v48 = vpop.permute.xlu0 %829  ;;  %v980_v23 = vsel %vm975_vm9, %v963_v36, %v3431_v24  ;;  %v998_v45 = vsel %vm992_vm10, %v3478_v0, %v838_v46 }
 0x21d   :  { %v994_v33 = vsel %vm992_vm10, %v977_v7, %v830_v48  ;;  %v846_v7 = vpop.permute.xlu2 %845 }
 0x21e   :  { %2381 = vmatmul.msk.f32.gmra.mxu0 %vm1067_vm11, %v994_v33  ;;  %2398 = vmatmul.msk.f32.gmra.mxu1 %vm1067_vm11, %v994_v33 }
 0x223   :  { %v844_v51 = vpop.permute.xlu1 %843 }
 0x224   :  { %v836_v56 = vpop.permute.xlu0 %835  ;;  %v1001_v49 = vsel %vm992_vm10, %v3492_v43, %v844_v51 }
 0x225   :  { %v997_v14 = vsel %vm992_vm10, %v980_v23, %v836_v56  ;;  %v852_v2 = vpop.permute.xlu2 %851 }
 0x226   :  { %2382 = vmatmul.msk.f32.gmra.mxu0 %vm1067_vm11, %v995_v12  ;;  %2399 = vmatmul.msk.f32.gmra.mxu1 %vm1067_vm11, %v995_v12 }
 0x22b   :  { %v850_v48 = vpop.permute.xlu1 %849 }
 0x22c   :  { %v842_v53 = vpop.permute.xlu0 %841  ;;  %v1004_v43 = vsel %vm992_vm10, %v3503_v57, %v850_v48 }
 0x22d   :  { %v1000_v0 = vsel %vm992_vm10, %v3437_v1, %v842_v53  ;;  %v1002_v1 = vsel %vm992_vm10, %v3475_v63, %v846_v7  ;;  %v1005_v63 = vsel %vm992_vm10, %v3489_v11, %v852_v2  ;;  %v1307_v11 = vld [vmem:[#allocation2 + $0xa1] sm:$0xff] }
 0x22e   :  { %2383 = vmatmul.msk.f32.gmra.mxu0 %vm1067_vm11, %v996_v32  ;;  %2400 = vmatmul.msk.f32.gmra.mxu1 %vm1067_vm11, %v996_v32 }
 0x22f   :  { %1459 = vrot.lane.b32.xlu2 %v1307_v11, %s2467_s11 }
 0x233   :  { %v856_v24 = vpop.permute.xlu1 %855 }
 0x234   :  { %v848_v40 = vpop.permute.xlu0 %847  ;;  %v1007_v3 = vsel %vm992_vm10, %v990_v50, %v856_v24 }
 0x236   :  { %2384 = vmatmul.msk.f32.gmra.mxu0 %vm1067_vm11, %v997_v14  ;;  %2401 = vmatmul.msk.f32.gmra.mxu1 %vm1067_vm11, %v997_v14 }
 0x23c   :  { %v854_v33 = vpop.permute.xlu0 %853 }
 0x23d   :  { %v1006_v10 = vsel %vm992_vm10, %v3456_v59, %v854_v33  ;;  %v858_v59 = vpop.permute.xlu2 %857 }
 0x23e   :  { %2385 = vmatmul.msk.f32.gmra.mxu0 %vm1067_vm11, %v998_v45  ;;  %2393 = vmatmul.msk.f32.vlgmr.msra.gmra.mxu3 %vm1067_vm11, %v1006_v10  ;;  %v1008_v39 = vsel %vm992_vm10, %v3500_v54, %v858_v59  ;;  %v1003_v54 = vsel %vm992_vm10, %v3444_v4, %v848_v40  ;;  %v3624_v4 = vld [vmem:[%s4561_s2] sm:$0x3]  ;;  %s2474_s2 = smov 40  }
 0x23f   :  { %2402 = vmatmul.msk.f32.gmra.mxu1 %vm1067_vm11, %v998_v45  ;;  %4689 = vst [vmem:[#allocation26_spill] sm:$0xff] %v3624_v4  ;;  %v3629_v50 = vperm.slane %v3624_v4, 0 }
 0x246   :  { %2386 = vmatmul.msk.f32.gmra.mxu0 %vm1067_vm11, %v999_v19  ;;  %2394 = vmatmul.msk.f32.gmra.mxu3 %vm1067_vm11, %v1007_v3 }
 0x247   :  { %2403 = vmatmul.msk.f32.gmra.mxu1 %vm1067_vm11, %v999_v19 }
 0x24e   :  { %2387 = vmatmul.msk.f32.gmra.mxu0 %vm1067_vm11, %v1000_v0  ;;  %2395 = vmatmul.msk.f32.gmra.mxu3 %vm1067_vm11, %v1008_v39 }
 0x24f   :  { %2404 = vmatmul.msk.f32.gmra.mxu1 %vm1067_vm11, %v1000_v0 }
 0x256   :  { %2388 = vmatmul.msk.f32.gmra.mxu0 %vm1067_vm11, %v1001_v49  ;;  %2410 = vmatmul.msk.f32.vlgmr.msrb.gmra.mxu3 %vm1067_vm11, %v1006_v10 }
 0x257   :  { %2405 = vmatmul.msk.f32.gmra.mxu1 %vm1067_vm11, %v1001_v49 }
 0x25e   :  { %2389 = vmatmul.msk.f32.gmra.mxu0 %vm1067_vm11, %v1002_v1  ;;  %2411 = vmatmul.msk.f32.gmra.mxu3 %vm1067_vm11, %v1007_v3 }
 0x25f   :  { %2406 = vmatmul.msk.f32.gmra.mxu1 %vm1067_vm11, %v1002_v1 }
 0x266   :  { %2390 = vmatmul.msk.f32.gmra.mxu0 %vm1067_vm11, %v1003_v54  ;;  %2412 = vmatmul.msk.f32.gmra.mxu3 %vm1067_vm11, %v1008_v39 }
 0x267   :  { %2407 = vmatmul.msk.f32.gmra.mxu1 %vm1067_vm11, %v1003_v54 }
 0x26e   :  { %2391 = vmatmul.msk.f32.gmra.mxu0 %vm1067_vm11, %v1004_v43 }
 0x26f   :  { %2408 = vmatmul.msk.f32.gmra.mxu1 %vm1067_vm11, %v1004_v43 }
 0x276   :  { %2392 = vmatmul.msk.f32.gmra.mxu0 %vm1067_vm11, %v1005_v63 }
 0x277   :  { %2409 = vmatmul.msk.f32.gmra.mxu1 %vm1067_vm11, %v1005_v63 }
 0x27b   :  { %v1138_v57 = vpop.f32.mrf.mxu0 }
 0x27c   :  { %v3632_v61 = vadd.f32 %v1138_v57, %v3629_v50 }
 0x27e   :  { %4690 = vst [vmem:[#allocation27_spill] sm:$0xff] %v3632_v61  ;;  %v1251_v13 = vmax.f32 %v3632_v61, 0.0 }
 0x280   :  { %1267 = vst.msk [vmem:[#allocation2 + $0x11] sm:$0xff] %vm20_vm0, %v1251_v13 }
 0x287   :  { %v3637_v21 = vld [vmem:[#allocation2 + $0x11] sm:$0xff] }
 0x288   :  { %1445 = vrot.lane.b32.xlu1 %v3637_v21, %s2467_s11  ;;  %v3725_v33 = vld [vmem:[#allocation2 + $0x12] sm:$0xff] }
 0x290   :  { %1507 = vrot.lane.b32.xlu1 %v1315_v26, %s2469_s26 }
 0x29b   :  { %v1141_v35 = vpop.f32.mrf.mxu0 }
 0x29c   :  { %v3644_v47 = vadd.f32 %v1141_v35, %v3629_v50  ;;  %v1323_v35 = vld [vmem:[#allocation2 + $0xa2] sm:$0xff] }
 0x29e   :  { %4691 = vst [vmem:[#allocation28_spill] sm:$0xff] %v3644_v47  ;;  %v1252_v6 = vmax.f32 %v3644_v47, 0.0 }
 0x2a0   :  { %1268 = vst.msk [vmem:[#allocation2 + $0x21] sm:$0xff] %vm20_vm0, %v1252_v6 }
 0x2a3   :  { %v1144_v27 = vpop.f32.mrf.mxu0 }
 0x2a4   :  { %v3649_v46 = vadd.f32 %v1144_v27, %v3629_v50 }
 0x2a6   :  { %4692 = vst [vmem:[#allocation3_spill] sm:$0xff] %v3649_v46  ;;  %v1253_v56 = vmax.f32 %v3649_v46, 0.0 }
 0x2a7   :  { %v3652_v12 = vld [vmem:[#allocation2 + $0x21] sm:$0xff] }
 0x2a8   :  { %1269 = vst.msk [vmem:[#allocation2 + $0x31] sm:$0xff] %vm20_vm0, %v1253_v56  ;;  %1447 = vrot.lane.b32.xlu2 %v3652_v12, %s2467_s11  ;;  %v3735_v24 = vld [vmem:[#allocation2 + $0x22] sm:$0xff] }
 0x2ab   :  { %v1147_v22 = vpop.f32.mrf.mxu0 }
 0x2ac   :  { %v3658_v62 = vadd.f32 %v1147_v22, %v3629_v50  ;;  %v3790_v22 = vld [vmem:[#allocation2 + $0x10] sm:$0xff] }
 0x2ae   :  { %4693 = vst [vmem:[#allocation40_spill] sm:$0xff] %v3658_v62  ;;  %v1254_v44 = vmax.f32 %v3658_v62, 0.0 }
 0x2af   :  { %v3661_v37 = vld [vmem:[#allocation2 + $0x32] sm:$0xff] }
 0x2b0   :  { %v3663_v41 = vld [vmem:[#allocation2 + $0x31] sm:$0xff]  ;;  %1270 = vst.msk [vmem:[#allocation2 + $0x41] sm:$0xff] %vm20_vm0, %v1254_v44  ;;  %1513 = vrot.lane.b32.xlu1 %v3661_v37, %s2469_s26 }
 0x2b1   :  { %1449 = vrot.lane.b32.xlu0 %v3663_v41, %s2467_s11  ;;  %v3767_v57 = vld [vmem:[#allocation2 + $0x30] sm:$0xff] }
 0x2b3   :  { %v1150_v31 = vpop.f32.mrf.mxu0 }
 0x2b4   :  { %v3671_v9 = vadd.f32 %v1150_v31, %v3629_v50 }
 0x2b6   :  { %4694 = vst [vmem:[#allocation19_spill] sm:$0xff] %v3671_v9  ;;  %v1255_v17 = vmax.f32 %v3671_v9, 0.0 }
 0x2b7   :  { %v3674_v18 = vld [vmem:[#allocation2 + $0x41] sm:$0xff] }
 0x2b8   :  { %1271 = vst.msk [vmem:[#allocation2 + $0x51] sm:$0xff] %vm20_vm0, %v1255_v17  ;;  %1451 = vrot.lane.b32.xlu1 %v3674_v18, %s2467_s11  ;;  %v3759_v54 = vld [vmem:[#allocation2 + $0x42] sm:$0xff] }
 0x2b9   :  { %v3803_v31 = vld [vmem:[#allocation2 + $0x40] sm:$0xff] }
 0x2bb   :  { %v1153_v20 = vpop.f32.mrf.mxu0 }
 0x2bc   :  { %v3680_v42 = vadd.f32 %v1153_v20, %v3629_v50 }
 0x2be   :  { %4695 = vst [vmem:[#allocation17_spill] sm:$0xff] %v3680_v42  ;;  %v1256_v5 = vmax.f32 %v3680_v42, 0.0 }
 0x2bf   :  { %v3742_v3 = vld [vmem:[#allocation2 + $0x51] sm:$0xff] }
 0x2c0   :  { %1272 = vst.msk [vmem:[#allocation2 + $0x61] sm:$0xff] %vm20_vm0, %v1256_v5  ;;  %v3752_v49 = vld [vmem:[#allocation2 + $0x52] sm:$0xff] }
 0x2c1   :  { %v1177_v29 = vpop.f32.mrf.mxu3 }
 0x2c2   :  { %v3685_v30 = vadd.f32 %v1177_v29, %v3629_v50  ;;  %v3819_v29 = vld [vmem:[#allocation2 + $0x20] sm:$0xff] }
 0x2c3   :  { %v1156_v53 = vpop.f32.mrf.mxu0 }
 0x2c4   :  { %4696 = vst [vmem:[#allocation7_spill] sm:$0xff] %v3685_v30  ;;  %v1264_v32 = vmax.f32 %v3685_v30, 0.0  ;;  %v3689_v60 = vadd.f32 %v1156_v53, %v3629_v50 }
 0x2c6   :  { %4697 = vst [vmem:[#allocation30_spill] sm:$0xff] %v3689_v60  ;;  %v1257_v38 = vmax.f32 %v3689_v60, 0.0 }
 0x2c7   :  { %1280 = vst.msk [vmem:[#allocation2 + $0x101] sm:$0xff] %vm20_vm0, %v1264_v32  ;;  %v3733_v2 = vld [vmem:[#allocation2 + $0x62] sm:$0xff] }
 0x2c8   :  { %1273 = vst.msk [vmem:[#allocation2 + $0x71] sm:$0xff] %vm20_vm0, %v1257_v38  ;;  %v3769_v13 = vld [vmem:[#allocation2 + $0x61] sm:$0xff] }
 0x2c9   :  { %v1180_v15 = vpop.f32.mrf.mxu3  ;;  %v3807_v17 = vld [vmem:[#allocation2 + $0x60] sm:$0xff] }
 0x2ca   :  { %v3695_v51 = vadd.f32 %v1180_v15, %v3629_v50 }
 0x2cb   :  { %v1159_v25 = vpop.f32.mrf.mxu0 }
 0x2cc   :  { %4698 = vst [vmem:[#allocation4_spill] sm:$0xff] %v3695_v51  ;;  %v1265_v16 = vmax.f32 %v3695_v51, 0.0  ;;  %v3699_v58 = vadd.f32 %v1159_v25, %v3629_v50  ;;  %v3835_v25 = vpop.permute.xlu2 %1459 }
 0x2ce   :  { %4699 = vst [vmem:[#allocation36_spill] sm:$0xff] %v3699_v58  ;;  %v3701_v8 = vld [vmem:[#allocation2 + $0x101] sm:$0xff]  ;;  %v1258_v52 = vmax.f32 %v3699_v58, 0.0 }
 0x2cf   :  { %1281 = vst.msk [vmem:[#allocation2 + $0x111] sm:$0xff] %vm20_vm0, %v1265_v16  ;;  %1471 = vrot.lane.b32.xlu2 %v3701_v8, %s2467_s11  ;;  %v3750_v39 = vld [vmem:[#allocation2 + $0x71] sm:$0xff] }
 0x2d0   :  { %1274 = vst.msk [vmem:[#allocation2 + $0x81] sm:$0xff] %vm20_vm0, %v1258_v52  ;;  %v3776_v28 = vld [vmem:[#allocation2 + $0x72] sm:$0xff] }
 0x2d1   :  { %v1183_v55 = vpop.f32.mrf.mxu3  ;;  %v3841_v16 = vld [vmem:[#allocation2 + $0x70] sm:$0xff] }
 0x2d2   :  { %v3709_v34 = vadd.f32 %v1183_v55, %v3629_v50 }
 0x2d3   :  { %v1162_v36 = vpop.f32.mrf.mxu0 }
 0x2d4   :  { %4700 = vst [vmem:[#allocation41_spill] sm:$0xff] %v3709_v34  ;;  %v1266_v23 = vmax.f32 %v3709_v34, 0.0  ;;  %v3713_v40 = vadd.f32 %v1162_v36, %v3629_v50  ;;  %v3893_v34 = vpop.permute.xlu0 %1443 }
 0x2d5   :  { %4714 = vst [vmem:[#allocation20_spill] sm:$0xff] %v3893_v34 }
 0x2d6   :  { %4701 = vst [vmem:[#allocation33_spill] sm:$0xff] %v3713_v40  ;;  %v3715_v14 = vld [vmem:[#allocation2 + $0x112] sm:$0xff]  ;;  %v1259_v48 = vmax.f32 %v3713_v40, 0.0  ;;  %v3905_v40 = vld [vmem:[#allocation2 + $0x100] sm:$0xff] }
 0x2d7   :  { %4702 = vst [vmem:[#allocation5_spill] sm:$0xff] %v3715_v14  ;;  %v3717_v7 = vld [vmem:[#allocation2 + $0x111] sm:$0xff]  ;;  %1537 = vrot.lane.b32.xlu1 %v3715_v14, %s2469_s26  ;;  %1509 = vrot.lane.b32.xlu2 %v3725_v33, %s2469_s26  ;;  %v3919_v60 = vld [vmem:[#allocation2 + $0x81] sm:$0xff] }
 0x2d8   :  { %4703 = vst [vmem:[#allocation6_spill] sm:$0xff] %v3717_v7  ;;  %1473 = vrot.lane.b32.xlu0 %v3717_v7, %s2467_s11 }
 0x2d9   :  { %1282 = vst.msk [vmem:[#allocation2 + $0x121] sm:$0xff] %vm20_vm0, %v1266_v23 }
 0x2da   :  { %1275 = vst.msk [vmem:[#allocation2 + $0xb1] sm:$0xff] %vm20_vm0, %v1259_v48 }
 0x2db   :  { %v1165_v45 = vpop.f32.mrf.mxu0 }
 0x2dc   :  { %v3731_v10 = vadd.f32 %v1165_v45, %v3629_v50 }
 0x2de   :  { %4704 = vst [vmem:[#allocation9_spill] sm:$0xff] %v3731_v10  ;;  %v1260_v19 = vmax.f32 %v3731_v10, 0.0 }
 0x2df   :  { %1519 = vrot.lane.b32.xlu1 %v3733_v2, %s2469_s26  ;;  %1453 = vrot.lane.b32.xlu2 %v3742_v3, %s2467_s11 }
 0x2e0   :  { %1511 = vrot.lane.b32.xlu0 %v3735_v24, %s2469_s26  ;;  %1276 = vst.msk [vmem:[#allocation2 + $0xc1] sm:$0xff] %vm20_vm0, %v1260_v19  ;;  %v3863_v19 = vld [vmem:[#allocation2 + $0x50] sm:$0xff] }
 0x2e1   :  { %v3784_v27 = vld [vmem:[#allocation2 + $0xb2] sm:$0xff] }
 0x2e2   :  { %v3809_v20 = vld [vmem:[#allocation2 + $0xb1] sm:$0xff] }
 0x2e3   :  { %v1168_v59 = vpop.f32.mrf.mxu0  ;;  %v3845_v52 = vld [vmem:[#allocation2 + $0xb0] sm:$0xff] }
 0x2e4   :  { %v3748_v0 = vadd.f32 %v1168_v59, %v3629_v50 }
 0x2e6   :  { %4705 = vst [vmem:[#allocation15_spill] sm:$0xff] %v3748_v0  ;;  %v1261_v1 = vmax.f32 %v3748_v0, 0.0 }
 0x2e7   :  { %1457 = vrot.lane.b32.xlu1 %v3750_v39, %s2467_s11  ;;  %1515 = vrot.lane.b32.xlu2 %v3759_v54, %s2469_s26  ;;  %v3795_v44 = vld [vmem:[#allocation2 + $0xc1] sm:$0xff] }
 0x2e8   :  { %1517 = vrot.lane.b32.xlu0 %v3752_v49, %s2469_s26  ;;  %1277 = vst.msk [vmem:[#allocation2 + $0xd1] sm:$0xff] %vm20_vm0, %v1261_v1  ;;  %v3815_v5 = vld [vmem:[#allocation2 + $0xc2] sm:$0xff] }
 0x2e9   :  { %v3869_v59 = vld [vmem:[#allocation2 + $0xc0] sm:$0xff] }
 0x2eb   :  { %v1171_v43 = vpop.f32.mrf.mxu0 }
 0x2ec   :  { %v3765_v63 = vadd.f32 %v1171_v43, %v3629_v50 }
 0x2ee   :  { %4706 = vst [vmem:[#allocation12_spill] sm:$0xff] %v3765_v63  ;;  %v1262_v11 = vmax.f32 %v3765_v63, 0.0 }
 0x2ef   :  { %1575 = vrot.lane.b32.xlu1 %v3767_v57, %s2471_s13  ;;  %1521 = vrot.lane.b32.xlu2 %v3776_v28, %s2469_s26  ;;  %v3827_v32 = vld [vmem:[#allocation2 + $0xd1] sm:$0xff] }
 0x2f0   :  { %1455 = vrot.lane.b32.xlu0 %v3769_v13, %s2467_s11  ;;  %1278 = vst.msk [vmem:[#allocation2 + $0xe1] sm:$0xff] %vm20_vm0, %v1262_v11  ;;  %v3833_v15 = vld [vmem:[#allocation2 + $0xd2] sm:$0xff] }
 0x2f1   :  { %4709 = vst [vmem:[#allocation14_spill] sm:$0xff] %v3827_v32  ;;  %v3877_v11 = vld [vmem:[#allocation2 + $0x110] sm:$0xff] }
 0x2f2   :  { %4711 = vst [vmem:[#allocation23_spill] sm:$0xff] %v3833_v15  ;;  %v3891_v51 = vld [vmem:[#allocation2 + $0xd0] sm:$0xff] }
 0x2f3   :  { %v1174_v26 = vpop.f32.mrf.mxu0 }
 0x2f4   :  { %v3782_v6 = vadd.f32 %v1174_v26, %v3629_v50  ;;  %v3797_v50 = vld [vmem:[#allocation2 + $0x102] sm:$0xff] }
 0x2f5   :  { %v3879_v26 = vld [vmem:[#allocation2 + $0x80] sm:$0xff] }
 0x2f6   :  { %4707 = vst [vmem:[#allocation32_spill] sm:$0xff] %v3782_v6  ;;  %v1263_v56 = vmax.f32 %v3782_v6, 0.0  ;;  %v3901_v6 = vld [vmem:[#allocation2 + $0x120] sm:$0xff] }
 0x2f7   :  { %1525 = vrot.lane.b32.xlu1 %v3784_v27, %s2469_s26  ;;  %1571 = vrot.lane.b32.xlu2 %v3790_v22, %s2471_s13  ;;  %v3821_v53 = vld [vmem:[#allocation2 + $0xe2] sm:$0xff]  ;;  %4715 = vst [vmem:[#allocation8_spill] sm:$0xff] %v3901_v6 }
 0x2f8   :  { %1523 = vrot.lane.b32.xlu0 %v1323_v35, %s2469_s26  ;;  %1279 = vst.msk [vmem:[#allocation2 + $0xf1] sm:$0xff] %vm20_vm0, %v1263_v56  ;;  %v3847_v55 = vld [vmem:[#allocation2 + $0xe1] sm:$0xff] }
 0x2f9   :  { %4708 = vst [vmem:[#allocation38_spill] sm:$0xff] %v3821_v53  ;;  %v3861_v45 = vld [vmem:[#allocation2 + $0xe0] sm:$0xff] }
 0x2fa   :  { %4712 = vst [vmem:[#allocation29_spill] sm:$0xff] %v3847_v55  ;;  %v3859_v48 = vpop.permute.xlu1 %1445 }
 0x2ff   :  { %1463 = vrot.lane.b32.xlu1 %v3795_v44, %s2467_s11  ;;  %1577 = vrot.lane.b32.xlu2 %v3803_v31, %s2471_s13  ;;  %v3831_v38 = vld [vmem:[#allocation2 + $0xf1] sm:$0xff] }
 0x300   :  { %1535 = vrot.lane.b32.xlu0 %v3797_v50, %s2469_s26  ;;  %4710 = vst [vmem:[#allocation10_spill] sm:$0xff] %v3831_v38  ;;  %v3853_v36 = vld [vmem:[#allocation2 + $0xf2] sm:$0xff] }
 0x301   :  { %v3885_v35 = vld [vmem:[#allocation2 + $0xf0] sm:$0xff] }
 0x302   :  { %v3857_v23 = vpop.permute.xlu2 %1447  ;;  %v3875_v43 = vpop.permute.xlu1 %1507 }
 0x303   :  { %4713 = vst [vmem:[#allocation35_spill] sm:$0xff] %v3875_v43 }
 0x307   :  { %1581 = vrot.lane.b32.xlu1 %v3807_v17, %s2471_s13  ;;  %1527 = vrot.lane.b32.xlu2 %v3815_v5, %s2469_s26 }
 0x308   :  { %1461 = vrot.lane.b32.xlu0 %v3809_v20, %s2467_s11 }
 0x30f   :  { %1531 = vrot.lane.b32.xlu1 %v3821_v53, %s2469_s26  ;;  %1465 = vrot.lane.b32.xlu2 %v3827_v32, %s2467_s11 }
 0x310   :  { %1573 = vrot.lane.b32.xlu0 %v3819_v29, %s2471_s13 }
 0x317   :  { %1469 = vrot.lane.b32.xlu1 %v3831_v38, %s2467_s11  ;;  %1583 = vrot.lane.b32.xlu2 %v3841_v16, %s2471_s13 }
 0x318   :  { %1529 = vrot.lane.b32.xlu0 %v3833_v15, %s2469_s26 }
 0x31f   :  { %1587 = vrot.lane.b32.xlu1 %v3845_v52, %s2471_s13  ;;  %1533 = vrot.lane.b32.xlu2 %v3853_v36, %s2469_s26  ;;  %s2477_s26 = smov 56  }
 0x320   :  { %1467 = vrot.lane.b32.xlu0 %v3847_v55, %s2467_s11  ;;  %s2475_s11 = smov 64  }
 0x322   :  { %v3895_v63 = vpop.permute.xlu1 %1513 }
 0x323   :  { %v3913_v10 = vpop.permute.xlu0 %1449 }
 0x327   :  { %1593 = vrot.lane.b32.xlu1 %v3861_v45, %s2471_s13  ;;  %1589 = vrot.lane.b32.xlu2 %v3869_v59, %s2471_s13 }
 0x328   :  { %1579 = vrot.lane.b32.xlu0 %v3863_v19, %s2471_s13 }
 0x329   :  { %v3873_v1 = vpop.permute.xlu2 %1471 }
 0x32a   :  { %v3915_v0 = vpop.permute.xlu1 %1451 }
 0x32f   :  { %1599 = vrot.lane.b32.xlu1 %v3877_v11, %s2471_s13  ;;  %1595 = vrot.lane.b32.xlu2 %v3885_v35, %s2471_s13 }
 0x330   :  { %1585 = vrot.lane.b32.xlu0 %v3879_v26, %s2471_s13 }
 0x331   :  { %v3889_v56 = vpop.permute.xlu2 %1509 }
 0x337   :  { %1637 = vrot.lane.b32.xlu1 %v3652_v12, %s2473_s15  ;;  %1601 = vrot.lane.b32.xlu2 %v3901_v6, %s2471_s13 }
 0x338   :  { %1591 = vrot.lane.b32.xlu0 %v3891_v51, %s2471_s13 }
 0x339   :  { %v1454_v30 = vpop.permute.xlu2 %1453 }
 0x33f   :  { %1643 = vrot.lane.b32.xlu1 %v3742_v3, %s2473_s15  ;;  %1639 = vrot.lane.b32.xlu2 %v3663_v41, %s2473_s15 }
 0x340   :  { %1597 = vrot.lane.b32.xlu0 %v3905_v40, %s2471_s13 }
 0x341   :  { %v3917_v42 = vpop.permute.xlu2 %1515 }
 0x347   :  { %1649 = vrot.lane.b32.xlu1 %v3919_v60, %s2473_s15  ;;  %1645 = vrot.lane.b32.xlu2 %v3769_v13, %s2473_s15 }
 0x348   :  { %1635 = vrot.lane.b32.xlu0 %v3637_v21, %s2473_s15 }
 0x349   :  { %v3927_v58 = vpop.permute.xlu1 %1537  ;;  %v1522_v62 = vpop.permute.xlu2 %1521 }
 0x34a   :  { %v3929_v46 = vpop.permute.xlu0 %1473 }
 0x34f   :  { %1655 = vrot.lane.b32.xlu1 %v3827_v32, %s2473_s15  ;;  %1651 = vrot.lane.b32.xlu2 %v3809_v20, %s2473_s15  ;;  %v3971_v32 = vld [vmem:[#allocation2 + $0x121] sm:$0xff] }
 0x350   :  { %1641 = vrot.lane.b32.xlu0 %v3674_v18, %s2473_s15  ;;  %4717 = vst [vmem:[#allocation25_spill] sm:$0xff] %v3971_v32 }
 0x351   :  { %v1520_v9 = vpop.permute.xlu1 %1519  ;;  %v3939_v21 = vpop.permute.xlu2 %1571 }
 0x352   :  { %v3937_v4 = vpop.permute.xlu0 %1511  ;;  %4716 = vst [vmem:[#allocation22_spill] sm:$0xff] %v3939_v21 }
 0x357   :  { %1661 = vrot.lane.b32.xlu1 %v3701_v8, %s2473_s15  ;;  %1657 = vrot.lane.b32.xlu2 %v3847_v55, %s2473_s15 }
 0x358   :  { %1647 = vrot.lane.b32.xlu0 %v3750_v39, %s2473_s15 }
 0x359   :  { %v1458_v61 = vpop.permute.xlu1 %1457  ;;  %v3949_v20 = vpop.permute.xlu2 %1577 }
 0x35a   :  { %v1518_v47 = vpop.permute.xlu0 %1517  ;;  %v1946_v43 = vsel %vm20_vm0, %v3841_v16, %v1458_v61 }
 0x35b   :  { %v3952_v34 = vsel %vm924_vm5, %v1946_v43, %v1522_v62 }
 0x35f   :  { %1699 = vrot.lane.b32.xlu1 %v3725_v33, %s2474_s2  ;;  %1663 = vrot.lane.b32.xlu2 %v3717_v7, %s2473_s15 }
 0x360   :  { %1653 = vrot.lane.b32.xlu0 %v3795_v44, %s2473_s15 }
 0x361   :  { %v3960_v21 = vpop.permute.xlu1 %1575  ;;  %v1528_v53 = vpop.permute.xlu2 %1527 }
 0x362   :  { %v1456_v55 = vpop.permute.xlu0 %1455 }
 0x363   :  { %v1945_v61 = vsel %vm20_vm0, %v3807_v17, %v1456_v55 }
 0x364   :  { %v1961_v62 = vsel %vm924_vm5, %v1945_v61, %v1520_v9 }
 0x367   :  { %1705 = vrot.lane.b32.xlu1 %v3759_v54, %s2474_s2  ;;  %1701 = vrot.lane.b32.xlu2 %v3735_v24, %s2474_s2 }
 0x368   :  { %1659 = vrot.lane.b32.xlu0 %v3831_v38, %s2473_s15 }
 0x369   :  { %v1526_v33 = vpop.permute.xlu1 %1525  ;;  %v1466_v14 = vpop.permute.xlu2 %1465 }
 0x36a   :  { %v1524_v43 = vpop.permute.xlu0 %1523 }
 0x36f   :  { %1711 = vrot.lane.b32.xlu1 %v3776_v28, %s2474_s2  ;;  %1707 = vrot.lane.b32.xlu2 %v3752_v49, %s2474_s2 }
 0x370   :  { %1665 = vrot.lane.b32.xlu0 %v3971_v32, %s2473_s15  ;;  %v1944_v32 = vsel %vm20_vm0, %v3863_v19, %v1454_v30 }
 0x371   :  { %v1464_v9 = vpop.permute.xlu1 %1463  ;;  %v1584_v38 = vpop.permute.xlu2 %1583 }
 0x372   :  { %v3979_v55 = vpop.permute.xlu0 %1535  ;;  %v1949_v61 = vsel %vm20_vm0, %v3869_v59, %v1464_v9  ;;  %v3984_v6 = vsel %vm958_vm8, %v1961_v62, %v1584_v38  ;;  %v1960_v38 = vsel %vm924_vm5, %v1944_v32, %v1518_v47  ;;  %v1940_v47 = vsel %vm20_vm0, %v3790_v22, %v3859_v48 }
 0x373   :  { %v3987_v15 = vsel %vm924_vm5, %v1949_v61, %v1528_v53  ;;  %v1956_v30 = vsel %vm924_vm5, %v1940_v47, %v3889_v56  ;;  %v1950_v22 = vsel %vm20_vm0, %v3891_v51, %v1466_v14 }
 0x377   :  { %1891 = vrot.lane.b32.xlu1 %v3735_v24, %s2475_s11  ;;  %1763 = vrot.lane.b32.xlu2 %v3819_v29, %s2476_s0 }
 0x378   :  { %1703 = vrot.lane.b32.xlu0 %v3661_v37, %s2474_s2 }
 0x379   :  { %v1582_v62 = vpop.permute.xlu1 %1581  ;;  %v1534_v61 = vpop.permute.xlu2 %1533 }
 0x37a   :  { %v1462_v9 = vpop.permute.xlu0 %1461  ;;  %v3999_v53 = vsel %vm958_vm8, %v1960_v38, %v1582_v62 }
 0x37b   :  { %v1948_v24 = vsel %vm20_vm0, %v3845_v52, %v1462_v9 }
 0x37c   :  { %v1964_v7 = vsel %vm924_vm5, %v1948_v24, %v1526_v33  ;;  %v1291_v24 = vld [vmem:[#allocation2 + $0xa0] sm:$0xff] }
 0x37d   :  { %v1947_v14 = vsel %vm20_vm0, %v1291_v24, %v3835_v25  ;;  %v1402_v24 = vld [vmem:[#allocation2 + $0x91] sm:$0xff] }
 0x37e   :  { %v1963_v47 = vsel %vm924_vm5, %v1947_v14, %v1524_v43  ;;  %v1943_v43 = vsel %vm20_vm0, %v3803_v31, %v3915_v0 }
 0x37f   :  { %1893 = vrot.lane.b32.xlu1 %v3661_v37, %s2475_s11  ;;  %1765 = vrot.lane.b32.xlu2 %v3767_v57, %s2476_s0 }
 0x380   :  { %1709 = vrot.lane.b32.xlu0 %v3733_v2, %s2474_s2 }
 0x381   :  { %v1532_v32 = vpop.permute.xlu1 %1531  ;;  %v1590_v38 = vpop.permute.xlu2 %1589 }
 0x382   :  { %v1574_v52 = vpop.permute.xlu0 %1573  ;;  %v4017_v37 = vsel %vm958_vm8, %v1964_v7, %v1590_v38 }
 0x383   :  { %v1972_v33 = vsel %vm958_vm8, %v1956_v30, %v1574_v52 }
 0x387   :  { %1895 = vrot.lane.b32.xlu1 %v3759_v54, %s2475_s11  ;;  %1767 = vrot.lane.b32.xlu2 %v3803_v31, %s2476_s0 }
 0x388   :  { %1827 = vrot.lane.b32.xlu0 %v3652_v12, %s2477_s26  ;;  %v1954_v12 = vsel %vm20_vm0, %v3877_v11, %v3929_v46 }
 0x389   :  { %v1470_v48 = vpop.permute.xlu1 %1469  ;;  %v1596_v7 = vpop.permute.xlu2 %1595  ;;  %v1970_v46 = vsel %vm924_vm5, %v1954_v12, %v3927_v58  ;;  %v1941_v58 = vsel %vm20_vm0, %v3819_v29, %v3857_v23 }
 0x38a   :  { %v1530_v56 = vpop.permute.xlu0 %1529  ;;  %v1952_v62 = vsel %vm20_vm0, %v3885_v35, %v1470_v48 }
 0x38b   :  { %v1966_v9 = vsel %vm924_vm5, %v1950_v22, %v1530_v56  ;;  %v1968_v54 = vsel %vm924_vm5, %v1952_v62, %v1534_v61 }
 0x38f   :  { %1897 = vrot.lane.b32.xlu1 %v3752_v49, %s2475_s11  ;;  %1769 = vrot.lane.b32.xlu2 %v3863_v19, %s2476_s0 }
 0x390   :  { %1829 = vrot.lane.b32.xlu0 %v3663_v41, %s2477_s26 }
 0x391   :  { %v1588_v61 = vpop.permute.xlu1 %1587  ;;  %v1602_v38 = vpop.permute.xlu2 %1601 }
 0x392   :  { %v1468_v30 = vpop.permute.xlu0 %1467  ;;  %v1979_v52 = vsel %vm958_vm8, %v1963_v47, %v1588_v61  ;;  %v4049_v41 = vsel %vm958_vm8, %v1970_v46, %v1602_v38  ;;  %v1418_v47 = vld [vmem:[#allocation2 + $0x92] sm:$0xff]  ;;  %v1942_v46 = vsel %vm20_vm0, %v3767_v57, %v3913_v10 }
 0x393   :  { %v1951_v49 = vsel %vm20_vm0, %v3861_v45, %v1468_v30  ;;  %v1386_v38 = vld [vmem:[#allocation2 + $0x90] sm:$0xff] }
 0x394   :  { %v1967_v25 = vsel %vm924_vm5, %v1951_v49, %v1532_v32  ;;  %v1959_v32 = vsel %vm924_vm5, %v1943_v43, %v3917_v42 }
 0x395   :  { %v4053_v19 = vsel %vm958_vm8, %v1967_v25, %v1596_v7  ;;  %v1417_v7 = vld [vmem:[#allocation2 + $0x82] sm:$0xff] }
 0x397   :  { %1899 = vrot.lane.b32.xlu1 %v3733_v2, %s2475_s11  ;;  %1771 = vrot.lane.b32.xlu2 %v3807_v17, %s2476_s0  ;;  %v1957_v2 = vsel %vm924_vm5, %v1941_v58, %v3937_v4  ;;  %v1953_v4 = vsel %vm20_vm0, %v3905_v40, %v3873_v1 }
 0x398   :  { %1831 = vrot.lane.b32.xlu0 %v3674_v18, %s2477_s26  ;;  %v1973_v18 = vsel %vm958_vm8, %v1957_v2, %v3960_v21  ;;  %v1969_v42 = vsel %vm924_vm5, %v1953_v4, %v3979_v55  ;;  %v2079_v2 = vld [vmem:[%s4562_s3 + $0x40] sm:$0xff]  ;;  %v2072_v4 = vld [vmem:[%s4562_s3 + $0x8] sm:$0xff] }
 0x399   :  { %v1594_v22 = vpop.permute.xlu1 %1593  ;;  %v1640_v23 = vpop.permute.xlu2 %1639  ;;  %2140 = vmatpush.msra.mxu2 %v2079_v2  ;;  %2439 = vmatpush.msra.mxu3 %v2079_v2 }
 0x39a   :  { %v1580_v48 = vpop.permute.xlu0 %1579  ;;  %v1982_v29 = vsel %vm958_vm8, %v1966_v9, %v1594_v22  ;;  %v4076_v0 = vsel %vm992_vm10, %v1973_v18, %v1640_v23  ;;  %v2073_v23 = vld [vmem:[%s4562_s3 + $0x10] sm:$0xff] }
 0x39b   :  { %v1975_v56 = vsel %vm958_vm8, %v1959_v32, %v1580_v48 }
 0x39f   :  { %1901 = vrot.lane.b32.xlu1 %v3776_v28, %s2475_s11  ;;  %1773 = vrot.lane.b32.xlu2 %v3841_v16, %s2476_s0 }
 0x3a0   :  { %1833 = vrot.lane.b32.xlu0 %v3742_v3, %s2477_s26 }
 0x3a1   :  { %v1600_v31 = vpop.permute.xlu1 %1599  ;;  %v1646_v62 = vpop.permute.xlu2 %1645 }
 0x3a2   :  { %v1586_v17 = vpop.permute.xlu0 %1585  ;;  %v1985_v21 = vsel %vm958_vm8, %v1969_v42, %v1600_v31  ;;  %v4094_v3 = vsel %vm992_vm10, %v3999_v53, %v1646_v62  ;;  %v4719_v62 = vld [vmem:[#allocation23_spill] sm:$0xff] }
 0x3a3   :  { %v1978_v28 = vsel %vm958_vm8, %v3952_v34, %v1586_v17 }
 0x3a7   :  { %1903 = vrot.lane.b32.xlu1 %v1417_v7, %s2475_s11  ;;  %1775 = vrot.lane.b32.xlu2 %v3879_v26, %s2476_s0 }
 0x3a8   :  { %1835 = vrot.lane.b32.xlu0 %v3769_v13, %s2477_s26 }
 0x3a9   :  { %v1638_v16 = vpop.permute.xlu1 %1637  ;;  %v1652_v9 = vpop.permute.xlu2 %1651 }
 0x3aa   :  { %v1592_v1 = vpop.permute.xlu0 %1591  ;;  %v4102_v55 = vsel %vm992_vm10, %v1972_v33, %v1638_v16  ;;  %v4107_v53 = vsel %vm992_vm10, %v1979_v52, %v1652_v9  ;;  %v4721_v9 = vld [vmem:[#allocation14_spill] sm:$0xff] }
 0x3ab   :  { %v1981_v34 = vsel %vm958_vm8, %v3987_v15, %v1592_v1  ;;  %v4720_v1 = vld [vmem:[#allocation8_spill] sm:$0xff] }
 0x3af   :  { %1841 = vrot.lane.b32.xlu1 %v1402_v24, %s2477_s26  ;;  %1713 = vrot.lane.b32.xlu2 %v1417_v7, %s2474_s2 }
 0x3b0   :  { %1837 = vrot.lane.b32.xlu0 %v3750_v39, %s2477_s26 }
 0x3b1   :  { %v1644_v13 = vpop.permute.xlu1 %1643  ;;  %v1658_v12 = vpop.permute.xlu2 %1657 }
 0x3b2   :  { %v1598_v26 = vpop.permute.xlu0 %1597  ;;  %v4114_v33 = vsel %vm992_vm10, %v1975_v56, %v1644_v13  ;;  %v4118_v15 = vsel %vm992_vm10, %v1982_v29, %v1658_v12  ;;  %v4201_v56 = vpop.f32.mrf.mxu1  ;;  %v1283_v12 = vld [vmem:[#allocation2] sm:$0xff] }
 0x3b3   :  { %v1984_v14 = vsel %vm958_vm8, %v1968_v54, %v1598_v26 }
 0x3b7   :  { %1723 = vrot.lane.b32.xlu1 %v3853_v36, %s2474_s2  ;;  %1905 = vrot.lane.b32.xlu2 %v1418_v47, %s2475_s11 }
 0x3b8   :  { %1839 = vrot.lane.b32.xlu0 %v3919_v60, %s2477_s26  ;;  %v1958_v60 = vsel %vm924_vm5, %v1942_v46, %v3895_v63 }
 0x3b9   :  { %v1650_v39 = vpop.permute.xlu1 %1649  ;;  %v1664_v52 = vpop.permute.xlu2 %1663  ;;  %v1974_v49 = vsel %vm958_vm8, %v1958_v60, %v3949_v20 }
 0x3ba   :  { %v4125_v61 = vpop.permute.xlu0 %1635  ;;  %v4128_v30 = vsel %vm992_vm10, %v1978_v28, %v1650_v39  ;;  %v4131_v54 = vsel %vm992_vm10, %v1985_v21, %v1664_v52  ;;  %v4725_v39 = vld [vmem:[#allocation29_spill] sm:$0xff] }
 0x3bf   :  { %1843 = vrot.lane.b32.xlu1 %v3795_v44, %s2477_s26  ;;  %1779 = vrot.lane.b32.xlu2 %v3869_v59, %s2476_s0 }
 0x3c0   :  { %1777 = vrot.lane.b32.xlu0 %v1386_v38, %s2476_s0 }
 0x3c1   :  { %v1656_v25 = vpop.permute.xlu1 %1655  ;;  %v4148_v10 = vpop.permute.xlu2 %1701 }
 0x3c2   :  { %v1642_v58 = vpop.permute.xlu0 %1641  ;;  %v4146_v43 = vsel %vm992_vm10, %v1981_v34, %v1656_v25 }
 0x3c3   :  { %v4151_v57 = vsel %vm992_vm10, %v1974_v49, %v1642_v58  ;;  %v4726_v49 = vld [vmem:[#allocation35_spill] sm:$0xff]  ;;  %v4727_v58 = vld [vmem:[#allocation22_spill] sm:$0xff] }
 0x3c7   :  { %1915 = vrot.lane.b32.xlu1 %v3797_v50, %s2475_s11  ;;  %1851 = vrot.lane.b32.xlu2 %v3701_v8, %s2477_s26  ;;  %v2077_v8 = vld [vmem:[%s4562_s3 + $0x30] sm:$0xff] }
 0x3c8   :  { %1715 = vrot.lane.b32.xlu0 %v3784_v27, %s2474_s2  ;;  %v2078_v27 = vld [vmem:[%s4562_s3 + $0x38] sm:$0xff] }
 0x3c9   :  { %v1662_v63 = vpop.permute.xlu1 %1661  ;;  %v4162_v20 = vpop.permute.xlu2 %1707  ;;  %2141 = vmatpush.msra.mxu2 %v2078_v27  ;;  %2440 = vmatpush.msra.mxu3 %v2078_v27  ;;  %v1378_v27 = vld [vmem:[#allocation2 + $0x122] sm:$0xff] }
 0x3ca   :  { %v1648_v44 = vpop.permute.xlu0 %1647  ;;  %v4160_v59 = vsel %vm992_vm10, %v1984_v14, %v1662_v63  ;;  %v4723_v14 = vld [vmem:[#allocation38_spill] sm:$0xff] }
 0x3cb   :  { %v4166_v32 = vsel %vm992_vm10, %v3984_v6, %v1648_v44  ;;  %2142 = vmatpush.msra.mxu2 %v2077_v8  ;;  %v2076_v6 = vld [vmem:[%s4562_s3 + $0x28] sm:$0xff]  ;;  %2441 = vmatpush.msra.mxu3 %v2077_v8 }
 0x3cd   :  { %2143 = vmatpush.msra.mxu2 %v2076_v6  ;;  %2442 = vmatpush.msra.mxu3 %v2076_v6 }
 0x3cf   :  { %1781 = vrot.lane.b32.xlu1 %v3891_v51, %s2476_s0  ;;  %1717 = vrot.lane.b32.xlu2 %v3815_v5, %s2474_s2  ;;  %v2075_v51 = vld [vmem:[%s4562_s3 + $0x20] sm:$0xff] }
 0x3d0   :  { %1787 = vrot.lane.b32.xlu0 %v3905_v40, %s2476_s0  ;;  %v2074_v40 = vld [vmem:[%s4562_s3 + $0x18] sm:$0xff]  ;;  %2144 = vmatpush.msra.mxu2 %v2075_v51 }
 0x3d1   :  { %v1700_v22 = vpop.permute.xlu1 %1699  ;;  %v4186_v18 = vpop.permute.xlu2 %1763  ;;  %2443 = vmatpush.msra.mxu3 %v2075_v51 }
 0x3d2   :  { %v1654_v48 = vpop.permute.xlu0 %1653  ;;  %2145 = vmatpush.msra.mxu2 %v2074_v40 }
 0x3d3   :  { %v4190_v29 = vsel %vm992_vm10, %v4017_v37, %v1654_v48  ;;  %v4718_v37 = vld [vmem:[#allocation6_spill] sm:$0xff]  ;;  %2444 = vmatpush.msra.mxu3 %v2074_v40 }
 0x3d4   :  { %2146 = vmatpush.msra.mxu2 %v2073_v23 }
 0x3d5   :  { %2445 = vmatpush.msra.mxu3 %v2073_v23  ;;  %v4729_v23 = vld [vmem:[#allocation25_spill] sm:$0xff] }
 0x3d6   :  { %2147 = vmatpush.msra.mxu2 %v2072_v4 }
 0x3d7   :  { %1853 = vrot.lane.b32.xlu1 %v4718_v37, %s2477_s26  ;;  %1789 = vrot.lane.b32.xlu2 %v3877_v11, %s2476_s0  ;;  %v4221_v11 = vpop.f32.mrf.mxu1 }
 0x3d8   :  { %1907 = vrot.lane.b32.xlu0 %v3815_v5, %s2475_s11  ;;  %v2071_v5 = vld [vmem:[%s4562_s3] sm:$0xff]  ;;  %2446 = vmatpush.msra.mxu3 %v2072_v4  ;;  %s2478_s3 = smov 120  }
 0x3d9   :  { %v4212_v42 = vpop.permute.xlu1 %1705  ;;  %v1766_v17 = vpop.permute.xlu2 %1765  ;;  %2148 = vmatpush.msra.mxu2 %v2071_v5 }
 0x3da   :  { %v1660_v31 = vpop.permute.xlu0 %1659  ;;  %2447 = vmatpush.msra.mxu3 %v2071_v5 }
 0x3db   :  { %v4216_v21 = vsel %vm992_vm10, %v4053_v19, %v1660_v31 }
 0x3df   :  { %1719 = vrot.lane.b32.xlu1 %v4719_v62, %s2474_s2  ;;  %1909 = vrot.lane.b32.xlu2 %v4719_v62, %s2475_s11  ;;  %v4239_v34 = vpop.f32.mrf.mxu1 }
 0x3e0   :  { %1725 = vrot.lane.b32.xlu0 %v3797_v50, %s2474_s2  ;;  %v4722_v50 = vld [vmem:[#allocation5_spill] sm:$0xff] }
 0x3e1   :  { %v4229_v19 = vpop.permute.xlu1 %1711  ;;  %v1768_v7 = vpop.permute.xlu2 %1767 }
 0x3e2   :  { %v1666_v28 = vpop.permute.xlu0 %1665 }
 0x3e3   :  { %v4233_v16 = vsel %vm992_vm10, %v4049_v41, %v1666_v28  ;;  %v4724_v41 = vld [vmem:[#allocation20_spill] sm:$0xff] }
 0x3e4   :  { %v1939_v47 = vsel %vm20_vm0, %v1283_v12, %v4724_v41  ;;  %vm2084_vm0 = vcmask 588800  }
 0x3e5   :  { %v1955_v25 = vsel %vm924_vm5, %v1939_v47, %v4726_v49  ;;  %v4731_v47 = vld [vmem:[#allocation27_spill] sm:$0xff] }
 0x3e6   :  { %v1971_v63 = vsel %vm958_vm8, %v1955_v25, %v4727_v58 }
 0x3e7   :  { %1791 = vrot.lane.b32.xlu1 %v4720_v1, %s2476_s0  ;;  %1727 = vrot.lane.b32.xlu2 %v4722_v50, %s2474_s2  ;;  %v4255_v46 = vpop.f32.mrf.mxu1  ;;  %v1987_v44 = vsel %vm992_vm10, %v1971_v63, %v4125_v61  ;;  %v1426_v1 = vld [vmem:[#allocation2 + $0x132] sm:$0xff] }
 0x3e8   :  { %1845 = vrot.lane.b32.xlu0 %v4721_v9, %s2477_s26  ;;  %v2004_v2 = vsel %vm2003_vm12, %v1987_v44, %v1700_v22  ;;  %v1410_v9 = vld [vmem:[#allocation2 + $0x131] sm:$0xff] }
 0x3e9   :  { %v1892_v24 = vpop.permute.xlu1 %1891  ;;  %v4243_v26 = vpop.permute.xlu2 %1769  ;;  %v2021_v8 = vsel %vm2020_vm13, %v2004_v2, %v4186_v18  ;;  %v2005_v18 = vsel %vm2003_vm12, %v4102_v55, %v4148_v10  ;;  %v4732_v63 = vld [vmem:[#allocation26_spill] sm:$0xff] }
 0x3ea   :  { %v1704_v13 = vpop.permute.xlu0 %1703  ;;  %v2022_v37 = vsel %vm2020_vm13, %v2005_v18, %v1766_v17  ;;  %v4320_v44 = vperm.slane %v4732_v63, 1 }
 0x3eb   :  { %v2006_v55 = vsel %vm2003_vm12, %v4076_v0, %v1704_v13  ;;  %v1394_v0 = vld [vmem:[#allocation2 + $0x130] sm:$0xff]  ;;  %v4730_v13 = vld [vmem:[#allocation28_spill] sm:$0xff] }
 0x3ec   :  { %v2023_v10 = vsel %vm2020_vm13, %v2006_v55, %v1768_v7  ;;  %v2007_v7 = vsel %vm2003_vm12, %v4151_v57, %v4212_v42  ;;  %v1210_v57 = vadd.f32 %v4239_v34, %v4320_v44  ;;  %v1207_v42 = vadd.f32 %v4221_v11, %v4320_v44 }
 0x3ef   :  { %1911 = vrot.lane.b32.xlu1 %v4723_v14, %s2475_s11  ;;  %1847 = vrot.lane.b32.xlu2 %v4725_v39, %s2477_s26  ;;  %v4276_v40 = vpop.f32.mrf.mxu1  ;;  %v2024_v39 = vsel %vm2020_vm13, %v2007_v7, %v4243_v26  ;;  %v2008_v26 = vsel %vm2003_vm12, %v4114_v33, %v4162_v20  ;;  %v4733_v33 = vld [vmem:[#allocation19_spill] sm:$0xff]  ;;  %v4738_v7 = vld [vmem:[#allocation17_spill] sm:$0xff] }
 0x3f0   :  { %1917 = vrot.lane.b32.xlu0 %v4722_v50, %s2475_s11 }
 0x3f1   :  { %v1894_v52 = vpop.permute.xlu1 %1893  ;;  %v4257_v60 = vpop.permute.xlu2 %1771 }
 0x3f2   :  { %v4253_v38 = vpop.permute.xlu0 %1709 }
 0x3f3   :  { %v2009_v20 = vsel %vm2003_vm12, %v4094_v3, %v4253_v38  ;;  %v1216_v3 = vadd.f32 %v4276_v40, %v4320_v44  ;;  %v4735_v38 = vld [vmem:[#allocation3_spill] sm:$0xff] }
 0x3f7   :  { %1729 = vrot.lane.b32.xlu1 %v1378_v27, %s2474_s2  ;;  %1919 = vrot.lane.b32.xlu2 %v1378_v27, %s2475_s11  ;;  %v1218_v50 = vpop.f32.mrf.mxu1  ;;  %v2025_v27 = vsel %vm2020_vm13, %v2008_v26, %v4257_v60  ;;  %v4734_v60 = vld [vmem:[#allocation40_spill] sm:$0xff] }
 0x3f8   :  { %1783 = vrot.lane.b32.xlu0 %v3861_v45, %s2476_s0  ;;  %v4728_v45 = vld [vmem:[#allocation10_spill] sm:$0xff] }
 0x3f9   :  { %v1896_v6 = vpop.permute.xlu1 %1895  ;;  %v4272_v61 = vpop.permute.xlu2 %1773 }
 0x3fa   :  { %v1828_v48 = vpop.permute.xlu0 %1827 }
 0x3fb   :  { %v2038_v22 = vsel %vm2037_vm14, %v2021_v8, %v1828_v48 }
 0x3fc   :  { %v2055_v51 = vsel %vm2054_vm15, %v2038_v22, %v1892_v24 }
 0x3fd   :  { %2413 = vmatmul.msk.f32.vlgmr.msra.gmra.mxu2 %vm2084_vm0, %v2055_v51  ;;  %v2026_v51 = vsel %vm2020_vm13, %v2009_v20, %v4272_v61  ;;  %v2010_v61 = vsel %vm2003_vm12, %v4166_v32, %v4229_v19  ;;  %v4736_v32 = vld [vmem:[#allocation36_spill] sm:$0xff]  ;;  %v4737_v19 = vld [vmem:[#allocation30_spill] sm:$0xff] }
 0x3ff   :  { %1849 = vrot.lane.b32.xlu1 %v4728_v45, %s2477_s26  ;;  %1785 = vrot.lane.b32.xlu2 %v3885_v35, %s2476_s0 }
 0x400   :  { %1855 = vrot.lane.b32.xlu0 %v4729_v23, %s2477_s26 }
 0x401   :  { %v1898_v4 = vpop.permute.xlu1 %1897  ;;  %v4289_v5 = vpop.permute.xlu2 %1775 }
 0x402   :  { %v1830_v31 = vpop.permute.xlu0 %1829 }
 0x403   :  { %v2039_v62 = vsel %vm2037_vm14, %v2022_v37, %v1830_v31  ;;  %v1219_v31 = vadd.f32 %v1218_v50, %v4320_v44  ;;  %v1213_v50 = vadd.f32 %v4255_v46, %v4320_v44 }
 0x404   :  { %v2056_v28 = vsel %vm2054_vm15, %v2039_v62, %v1894_v52  ;;  %v2027_v62 = vsel %vm2020_vm13, %v2010_v61, %v4289_v5 }
 0x405   :  { %2414 = vmatmul.msk.f32.gmra.mxu2 %vm2084_vm0, %v2056_v28 }
 0x407   :  { %1921 = vrot.lane.b32.xlu1 %v1426_v1, %s2475_s11  ;;  %1857 = vrot.lane.b32.xlu2 %v1410_v9, %s2477_s26 }
 0x408   :  { %1721 = vrot.lane.b32.xlu0 %v4723_v14, %s2474_s2  ;;  %v4309_v14 = vpop.f32.mrf.mxu1 }
 0x409   :  { %v1900_v35 = vpop.permute.xlu1 %1899  ;;  %v4301_v24 = vpop.permute.xlu2 %1713 }
 0x40a   :  { %v1832_v17 = vpop.permute.xlu0 %1831  ;;  %v2011_v5 = vsel %vm2003_vm12, %v4128_v30, %v4301_v24 }
 0x40b   :  { %v2040_v12 = vsel %vm2037_vm14, %v2023_v10, %v1832_v17 }
 0x40c   :  { %v2057_v41 = vsel %vm2054_vm15, %v2040_v12, %v1896_v6 }
 0x40d   :  { %2415 = vmatmul.msk.f32.gmra.mxu2 %vm2084_vm0, %v2057_v41 }
 0x40f   :  { %2234 = vrot.lane.b32.xlu1 %v4730_v13, %s2478_s3  ;;  %2230 = vrot.lane.b32.xlu2 %v4731_v47, %s2478_s3 }
 0x410   :  { %1793 = vrot.lane.b32.xlu0 %v1394_v0, %s2476_s0  ;;  %v1224_v34 = vpop.f32.mrf.mxu1 }
 0x411   :  { %v1902_v52 = vpop.permute.xlu1 %1901  ;;  %v1906_v25 = vpop.permute.xlu2 %1905  ;;  %v1225_v13 = vadd.f32 %v1224_v34, %v4320_v44 }
 0x412   :  { %v1834_v49 = vpop.permute.xlu0 %1833 }
 0x413   :  { %v2041_v58 = vsel %vm2037_vm14, %v2024_v39, %v1834_v49  ;;  %v4739_v49 = vld [vmem:[#allocation15_spill] sm:$0xff] }
 0x414   :  { %v2058_v2 = vsel %vm2054_vm15, %v2041_v58, %v1898_v4 }
 0x415   :  { %2416 = vmatmul.msk.f32.gmra.mxu2 %vm2084_vm0, %v2058_v2 }
 0x417   :  { %2240 = vrot.lane.b32.xlu1 %v1210_v57, %s2478_s3  ;;  %2236 = vrot.lane.b32.xlu2 %v1207_v42, %s2478_s3 }
 0x418   :  { %1913 = vrot.lane.b32.xlu0 %v3853_v36, %s2475_s11  ;;  %v1204_v36 = vadd.f32 %v4201_v56, %v4320_v44  ;;  %v1227_v37 = vpop.f32.mrf.mxu1 }
 0x419   :  { %v1904_v8 = vpop.permute.xlu1 %1903  ;;  %v4337_v48 = vpop.permute.xlu2 %1779  ;;  %v1228_v0 = vadd.f32 %v1227_v37, %v4320_v44 }
 0x41a   :  { %v1836_v6 = vpop.permute.xlu0 %1835 }
 0x41b   :  { %v2042_v11 = vsel %vm2037_vm14, %v2025_v27, %v1836_v6 }
 0x41c   :  { %v2059_v22 = vsel %vm2054_vm15, %v2042_v11, %v1900_v35  ;;  %v4741_v11 = vld [vmem:[#allocation33_spill] sm:$0xff] }
 0x41d   :  { %2417 = vmatmul.msk.f32.gmra.mxu2 %vm2084_vm0, %v2059_v22  ;;  %v1242_v22 = vpop.f32.mrf.mxu3 }
 0x41f   :  { %2246 = vrot.lane.b32.xlu1 %v4733_v33, %s2478_s3  ;;  %2242 = vrot.lane.b32.xlu2 %v4734_v60, %s2478_s3 }
 0x420   :  { %2232 = vrot.lane.b32.xlu0 %v1204_v36, %s2478_s3  ;;  %v1230_v55 = vpop.f32.mrf.mxu1 }
 0x421   :  { %v1842_v45 = vpop.permute.xlu1 %1841  ;;  %v1852_v4 = vpop.permute.xlu2 %1851 }
 0x422   :  { %v1838_v23 = vpop.permute.xlu0 %1837 }
 0x423   :  { %v2043_v18 = vsel %vm2037_vm14, %v2026_v51, %v1838_v23  ;;  %v1231_v51 = vadd.f32 %v1230_v55, %v4320_v44 }
 0x424   :  { %v2060_v56 = vsel %vm2054_vm15, %v2043_v18, %v1902_v52  ;;  %v1222_v52 = vadd.f32 %v4309_v14, %v4320_v44 }
 0x425   :  { %2418 = vmatmul.msk.f32.gmra.mxu2 %vm2084_vm0, %v2060_v56  ;;  %v1245_v56 = vpop.f32.mrf.mxu3 }
 0x426   :  { %v1246_v37 = vadd.f32 %v1245_v56, %v4320_v44 }
 0x427   :  { %2252 = vrot.lane.b32.xlu1 %v1219_v31, %s2478_s3  ;;  %2248 = vrot.lane.b32.xlu2 %v1216_v3, %s2478_s3  ;;  %v4744_v3 = vld [vmem:[#allocation12_spill] sm:$0xff] }
 0x428   :  { %2238 = vrot.lane.b32.xlu0 %v4735_v38, %s2478_s3  ;;  %v1233_v30 = vpop.f32.mrf.mxu1 }
 0x429   :  { %v1724_v28 = vpop.permute.xlu1 %1723  ;;  %v1718_v35 = vpop.permute.xlu2 %1717  ;;  %v1234_v34 = vadd.f32 %v1233_v30, %v4320_v44 }
 0x42a   :  { %v1840_v1 = vpop.permute.xlu0 %1839  ;;  %v2016_v58 = vsel %vm2003_vm12, %v4216_v21, %v1724_v28  ;;  %v2013_v38 = vsel %vm2003_vm12, %v4190_v29, %v1718_v35 }
 0x42b   :  { %v2044_v9 = vsel %vm2037_vm14, %v2027_v62, %v1840_v1 }
 0x42c   :  { %v2061_v40 = vsel %vm2054_vm15, %v2044_v9, %v1904_v8 }
 0x42d   :  { %2419 = vmatmul.msk.f32.gmra.mxu2 %vm2084_vm0, %v2061_v40 }
 0x42f   :  { %2258 = vrot.lane.b32.xlu1 %v4736_v32, %s2478_s3  ;;  %2254 = vrot.lane.b32.xlu2 %v4737_v19, %s2478_s3  ;;  %v4745_v32 = vld [vmem:[#allocation41_spill] sm:$0xff] }
 0x430   :  { %2244 = vrot.lane.b32.xlu0 %v1213_v50, %s2478_s3  ;;  %v1236_v57 = vpop.f32.mrf.mxu1 }
 0x431   :  { %v1844_v10 = vpop.permute.xlu1 %1843  ;;  %v1790_v24 = vpop.permute.xlu2 %1789  ;;  %v1237_v6 = vadd.f32 %v1236_v57, %v4320_v44 }
 0x432   :  { %v1778_v17 = vpop.permute.xlu0 %1777 }
 0x433   :  { %v2028_v12 = vsel %vm2020_vm13, %v2011_v5, %v1778_v17  ;;  %v4746_v17 = vld [vmem:[#allocation4_spill] sm:$0xff] }
 0x434   :  { %v2045_v46 = vsel %vm2037_vm14, %v2028_v12, %v1842_v45  ;;  %v4743_v45 = vld [vmem:[#allocation32_spill] sm:$0xff] }
 0x435   :  { %v2062_v41 = vsel %vm2054_vm15, %v2045_v46, %v1906_v25  ;;  %v4740_v25 = vld [vmem:[#allocation9_spill] sm:$0xff] }
 0x436   :  { %2420 = vmatmul.msk.f32.gmra.mxu2 %vm2084_vm0, %v2062_v41 }
 0x437   :  { %2264 = vrot.lane.b32.xlu1 %v1228_v0, %s2478_s3  ;;  %2260 = vrot.lane.b32.xlu2 %v1225_v13, %s2478_s3  ;;  %v1248_v0 = vpop.f32.mrf.mxu3 }
 0x438   :  { %2250 = vrot.lane.b32.xlu0 %v4738_v7, %s2478_s3  ;;  %v1239_v1 = vpop.f32.mrf.mxu1 }
 0x439   :  { %v1916_v47 = vpop.permute.xlu1 %1915  ;;  %v1910_v42 = vpop.permute.xlu2 %1909  ;;  %v1240_v55 = vadd.f32 %v1239_v1, %v4320_v44 }
 0x43a   :  { %v1716_v39 = vpop.permute.xlu0 %1715 }
 0x43b   :  { %v2012_v14 = vsel %vm2003_vm12, %v4107_v53, %v1716_v39 }
 0x43c   :  { %v2029_v21 = vsel %vm2020_vm13, %v2012_v14, %v4337_v48  ;;  %v4742_v48 = vld [vmem:[#allocation7_spill] sm:$0xff] }
 0x43d   :  { %v2046_v33 = vsel %vm2037_vm14, %v2029_v21, %v1844_v10  ;;  %v4474_v21 = vld [vmem:[%s4563_s4] ss:$0 sm:$0xff] }
 0x43f   :  { %2270 = vrot.lane.b32.xlu1 %v4739_v49, %s2478_s3  ;;  %2266 = vrot.lane.b32.xlu2 %v4740_v25, %s2478_s3 }
 0x440   :  { %2256 = vrot.lane.b32.xlu0 %v1222_v52, %s2478_s3 }
 0x441   :  { %v1782_v63 = vpop.permute.xlu1 %1781  ;;  %v1728_v60 = vpop.permute.xlu2 %1727 }
 0x442   :  { %v1788_v2 = vpop.permute.xlu0 %1787  ;;  %v2030_v61 = vsel %vm2020_vm13, %v2013_v38, %v1782_v63  ;;  %v2018_v39 = vsel %vm2003_vm12, %v4131_v54, %v1728_v60 }
 0x443   :  { %v2033_v26 = vsel %vm2020_vm13, %v2016_v58, %v1788_v2 }
 0x444   :  { %v2050_v27 = vsel %vm2037_vm14, %v2033_v26, %v1852_v4  ;;  %v1243_v4 = vadd.f32 %v1242_v22, %v4320_v44 }
 0x445   :  { %v2067_v8 = vsel %vm2054_vm15, %v2050_v27, %v1916_v47  ;;  %v1249_v47 = vadd.f32 %v1248_v0, %v4320_v44 }
 0x446   :  { %2425 = vmatmul.msk.f32.vlgmr.msra.gmra.mxu3 %vm2084_vm0, %v2067_v8 }
 0x447   :  { %2276 = vrot.lane.b32.xlu1 %v1237_v6, %s2478_s3  ;;  %2272 = vrot.lane.b32.xlu2 %v1234_v34, %s2478_s3 }
 0x448   :  { %2262 = vrot.lane.b32.xlu0 %v4741_v11, %s2478_s3 }
 0x449   :  { %v1854_v53 = vpop.permute.xlu1 %1853  ;;  %v1848_v31 = vpop.permute.xlu2 %1847 }
 0x44a   :  { %v1908_v36 = vpop.permute.xlu0 %1907 }
 0x44b   :  { %v2063_v20 = vsel %vm2054_vm15, %v2046_v33, %v1908_v36 }
 0x44c   :  { %2421 = vmatmul.msk.f32.gmra.mxu2 %vm2084_vm0, %v2063_v20 }
 0x44f   :  { %2282 = vrot.lane.b32.xlu1 %v4742_v48, %s2478_s3  ;;  %2278 = vrot.lane.b32.xlu2 %v4743_v45, %s2478_s3 }
 0x450   :  { %2268 = vrot.lane.b32.xlu0 %v1231_v51, %s2478_s3 }
 0x451   :  { %v1720_v23 = vpop.permute.xlu1 %1719  ;;  %v1920_v35 = vpop.permute.xlu2 %1919 }
 0x452   :  { %v1726_v18 = vpop.permute.xlu0 %1725  ;;  %v2014_v12 = vsel %vm2003_vm12, %v4146_v43, %v1720_v23 }
 0x453   :  { %v2017_v40 = vsel %vm2003_vm12, %v4160_v59, %v1726_v18 }
 0x454   :  { %v2034_v29 = vsel %vm2020_vm13, %v2017_v40, %v1790_v24 }
 0x455   :  { %v2051_v10 = vsel %vm2037_vm14, %v2034_v29, %v1854_v53 }
 0x457   :  { %2288 = vrot.lane.b32.xlu1 %v1246_v37, %s2478_s3  ;;  %2284 = vrot.lane.b32.xlu2 %v1243_v4, %s2478_s3 }
 0x458   :  { %2274 = vrot.lane.b32.xlu0 %v4744_v3, %s2478_s3 }
 0x459   :  { %v1792_v62 = vpop.permute.xlu1 %1791  ;;  %v1786_v13 = vpop.permute.xlu2 %1785 }
 0x45a   :  { %v1846_v28 = vpop.permute.xlu0 %1845  ;;  %v2035_v43 = vsel %vm2020_vm13, %v2018_v39, %v1792_v62 }
 0x45b   :  { %v2047_v9 = vsel %vm2037_vm14, %v2030_v61, %v1846_v28 }
 0x45c   :  { %v2064_v50 = vsel %vm2054_vm15, %v2047_v9, %v1910_v42 }
 0x45d   :  { %2422 = vmatmul.msk.f32.gmra.mxu2 %vm2084_vm0, %v2064_v50 }
 0x45f   :  { %2290 = vrot.lane.b32.xlu2 %v4745_v32, %s2478_s3 }
 0x460   :  { %2280 = vrot.lane.b32.xlu0 %v1240_v55, %s2478_s3 }
 0x461   :  { %v1912_v19 = vpop.permute.xlu1 %1911  ;;  %v1858_v63 = vpop.permute.xlu2 %1857 }
 0x462   :  { %v1918_v5 = vpop.permute.xlu0 %1917 }
 0x463   :  { %v2068_v59 = vsel %vm2054_vm15, %v2051_v10, %v1918_v5 }
 0x464   :  { %2426 = vmatmul.msk.f32.gmra.mxu3 %vm2084_vm0, %v2068_v59 }
 0x468   :  { %2286 = vrot.lane.b32.xlu0 %v4746_v17, %s2478_s3 }
 0x469   :  { %v1730_v46 = vpop.permute.xlu1 %1729  ;;  %v2231_v57 = vpop.permute.xlu2 %2230 }
 0x46a   :  { %v1784_v41 = vpop.permute.xlu0 %1783  ;;  %v2019_v26 = vsel %vm2003_vm12, %v4233_v16, %v1730_v46 }
 0x46b   :  { %v2031_v7 = vsel %vm2020_vm13, %v2014_v12, %v1784_v41 }
 0x46c   :  { %v2048_v30 = vsel %vm2037_vm14, %v2031_v7, %v1848_v31 }
 0x46d   :  { %v2065_v24 = vsel %vm2054_vm15, %v2048_v30, %v1912_v19 }
 0x46e   :  { %2423 = vmatmul.msk.f32.gmra.mxu2 %vm2084_vm0, %v2065_v24 }
 0x470   :  { %2292 = vrot.lane.b32.xlu0 %v1249_v47, %s2478_s3 }
 0x471   :  { %v1850_v49 = vpop.permute.xlu1 %1849  ;;  %v2237_v22 = vpop.permute.xlu2 %2236 }
 0x472   :  { %v1856_v52 = vpop.permute.xlu0 %1855 }
 0x473   :  { %v2052_v25 = vsel %vm2037_vm14, %v2035_v43, %v1856_v52 }
 0x474   :  { %v2069_v58 = vsel %vm2054_vm15, %v2052_v25, %v1920_v35 }
 0x475   :  { %2427 = vmatmul.msk.f32.gmra.mxu3 %vm2084_vm0, %v2069_v58 }
 0x479   :  { %v1922_v44 = vpop.permute.xlu1 %1921  ;;  %v2243_v37 = vpop.permute.xlu2 %2242 }
 0x47a   :  { %v1722_v2 = vpop.permute.xlu0 %1721 }
 0x47b   :  { %v2015_v27 = vsel %vm2003_vm12, %v4118_v15, %v1722_v2 }
 0x47c   :  { %v2032_v34 = vsel %vm2020_vm13, %v2015_v27, %v1786_v13 }
 0x47d   :  { %v2049_v33 = vsel %vm2037_vm14, %v2032_v34, %v1850_v49 }
 0x480   :  { %v2150_v42 = vpop.f32.mrf.mxu2 }
 0x481   :  { %v2235_v16 = vpop.permute.xlu1 %2234  ;;  %v2151_v45 = vadd.f32 %v4474_v21, %v2150_v42  ;;  %v2249_v9 = vpop.permute.xlu2 %2248 }
 0x482   :  { %v1794_v14 = vpop.permute.xlu0 %1793  ;;  %v2296_v15 = vsel %vm2294_vm1, %v2235_v16, %v2237_v22 }
 0x483   :  { %v2036_v54 = vsel %vm2020_vm13, %v2019_v26, %v1794_v14 }
 0x484   :  { %v2053_v8 = vsel %vm2037_vm14, %v2036_v54, %v1858_v63 }
 0x485   :  { %v2070_v6 = vsel %vm2054_vm15, %v2053_v8, %v1922_v44 }
 0x486   :  { %2428 = vmatmul.msk.f32.gmra.mxu3 %vm2084_vm0, %v2070_v6 }
 0x488   :  { %v2153_v11 = vpop.f32.mrf.mxu2 }
 0x489   :  { %v2154_v53 = vadd.f32 %v4474_v21, %v2153_v11  ;;  %v2241_v4 = vpop.permute.xlu1 %2240  ;;  %v2255_v46 = vpop.permute.xlu2 %2254 }
 0x48a   :  { %v1914_v36 = vpop.permute.xlu0 %1913 }
 0x48b   :  { %v2328_v20 = vadd.f32 %v2296_v15, %v2154_v53  ;;  %v2066_v60 = vsel %vm2054_vm15, %v2049_v33, %v1914_v36 }
 0x48c   :  { %2424 = vmatmul.msk.f32.gmra.mxu2 %vm2084_vm0, %v2066_v60 }
 0x48d   :  { %v2344_v51 = vmax.f32 %v2328_v20, 0.0 }
 0x48f   :  { %2360 = vst [vmem:[%s4564_s5 + $0x8] sm:$0xff] %v2344_v51 }
 0x490   :  { %v2156_v48 = vpop.f32.mrf.mxu2 }
 0x491   :  { %v2157_v38 = vadd.f32 %v4474_v21, %v2156_v48  ;;  %v2247_v40 = vpop.permute.xlu1 %2246  ;;  %v2261_v52 = vpop.permute.xlu2 %2260 }
 0x492   :  { %v2233_v23 = vpop.permute.xlu0 %2232  ;;  %v2299_v29 = vsel %vm2294_vm1, %v2247_v40, %v2249_v9 }
 0x493   :  { %v2295_v18 = vsel %vm2294_vm1, %v2231_v57, %v2233_v23 }
 0x494   :  { %v2327_v56 = vadd.f32 %v2295_v18, %v2151_v45 }
 0x496   :  { %v2343_v31 = vmax.f32 %v2327_v56, 0.0 }
 0x498   :  { %2359 = vst [vmem:[%s4564_s5] sm:$0xff] %v2343_v31  ;;  %v2159_v3 = vpop.f32.mrf.mxu2 }
 0x499   :  { %v2160_v35 = vadd.f32 %v4474_v21, %v2159_v3  ;;  %v2253_v0 = vpop.permute.xlu1 %2252  ;;  %v2267_v14 = vpop.permute.xlu2 %2266 }
 0x49a   :  { %v2239_v61 = vpop.permute.xlu0 %2238 }
 0x49b   :  { %v2297_v62 = vsel %vm2294_vm1, %v2239_v61, %v2241_v4 }
 0x49c   :  { %v2329_v28 = vadd.f32 %v2297_v62, %v2157_v38 }
 0x49e   :  { %v2345_v1 = vmax.f32 %v2329_v28, 0.0 }
 0x4a0   :  { %2361 = vst [vmem:[%s4564_s5 + $0x10] sm:$0xff] %v2345_v1  ;;  %v2162_v50 = vpop.f32.mrf.mxu2 }
 0x4a1   :  { %v2163_v55 = vadd.f32 %v4474_v21, %v2162_v50  ;;  %v2259_v63 = vpop.permute.xlu1 %2258  ;;  %v2273_v8 = vpop.permute.xlu2 %2272 }
 0x4a2   :  { %v2245_v32 = vpop.permute.xlu0 %2244  ;;  %v2302_v42 = vsel %vm2294_vm1, %v2259_v63, %v2261_v52 }
 0x4a3   :  { %v2331_v19 = vadd.f32 %v2299_v29, %v2163_v55  ;;  %v2298_v5 = vsel %vm2294_vm1, %v2243_v37, %v2245_v32 }
 0x4a4   :  { %v2330_v10 = vadd.f32 %v2298_v5, %v2160_v35 }
 0x4a5   :  { %v2347_v59 = vmax.f32 %v2331_v19, 0.0 }
 0x4a6   :  { %v2346_v17 = vmax.f32 %v2330_v10, 0.0 }
 0x4a7   :  { %2363 = vst [vmem:[%s4564_s5 + $0x20] sm:$0xff] %v2347_v59 }
 0x4a8   :  { %2362 = vst [vmem:[%s4564_s5 + $0x18] sm:$0xff] %v2346_v17  ;;  %v2165_v12 = vpop.f32.mrf.mxu2 }
 0x4a9   :  { %v2166_v41 = vadd.f32 %v4474_v21, %v2165_v12  ;;  %v2265_v6 = vpop.permute.xlu1 %2264  ;;  %v2279_v53 = vpop.permute.xlu2 %2278 }
 0x4aa   :  { %v2251_v13 = vpop.permute.xlu0 %2250 }
 0x4ab   :  { %v2300_v7 = vsel %vm2294_vm1, %v2251_v13, %v2253_v0 }
 0x4ac   :  { %v2332_v30 = vadd.f32 %v2300_v7, %v2166_v41 }
 0x4ae   :  { %v2348_v24 = vmax.f32 %v2332_v30, 0.0 }
 0x4b0   :  { %2364 = vst [vmem:[%s4564_s5 + $0x28] sm:$0xff] %v2348_v24  ;;  %v2168_v47 = vpop.f32.mrf.mxu2 }
 0x4b1   :  { %v2169_v39 = vadd.f32 %v4474_v21, %v2168_v47  ;;  %v2271_v36 = vpop.permute.xlu1 %2270  ;;  %v2285_v62 = vpop.permute.xlu2 %2284 }
 0x4b2   :  { %v2257_v43 = vpop.permute.xlu0 %2256  ;;  %v2305_v29 = vsel %vm2294_vm1, %v2271_v36, %v2273_v8 }
 0x4b3   :  { %v2301_v49 = vsel %vm2294_vm1, %v2255_v46, %v2257_v43 }
 0x4b4   :  { %v2333_v25 = vadd.f32 %v2301_v49, %v2169_v39 }
 0x4b6   :  { %v2349_v58 = vmax.f32 %v2333_v25, 0.0 }
 0x4b8   :  { %2365 = vst [vmem:[%s4564_s5 + $0x30] sm:$0xff] %v2349_v58 }
 0x4b9   :  { %v2171_v2 = vpop.f32.mrf.mxu2  ;;  %v2277_v18 = vpop.permute.xlu1 %2276 }
 0x4ba   :  { %v2172_v44 = vadd.f32 %v4474_v21, %v2171_v2  ;;  %v2263_v57 = vpop.permute.xlu0 %2262  ;;  %v2291_v13 = vpop.permute.xlu2 %2290 }
 0x4bb   :  { %v2303_v15 = vsel %vm2294_vm1, %v2263_v57, %v2265_v6 }
 0x4bc   :  { %v2334_v26 = vadd.f32 %v2302_v42, %v2172_v44 }
 0x4be   :  { %v2350_v54 = vmax.f32 %v2334_v26, 0.0 }
 0x4c0   :  { %2366 = vst [vmem:[%s4564_s5 + $0x38] sm:$0xff] %v2350_v54 }
 0x4c1   :  { %v2283_v38 = vpop.permute.xlu1 %2282 }
 0x4c2   :  { %v2269_v27 = vpop.permute.xlu0 %2268  ;;  %v2308_v1 = vsel %vm2294_vm1, %v2283_v38, %v2285_v62 }
 0x4c3   :  { %v2304_v4 = vsel %vm2294_vm1, %v2267_v14, %v2269_v27 }
 0x4c9   :  { %v2186_v16 = vpop.f32.mrf.mxu3  ;;  %v2289_v10 = vpop.permute.xlu1 %2288 }
 0x4ca   :  { %v2275_v34 = vpop.permute.xlu0 %2274  ;;  %v2187_v33 = vadd.f32 %v4474_v21, %v2186_v16 }
 0x4cb   :  { %v2306_v52 = vsel %vm2294_vm1, %v2275_v34, %v2277_v18 }
 0x4cf   :  { %v2174_v11 = vpop.f32.mrf.mxu2 }
 0x4d0   :  { %v2175_v22 = vadd.f32 %v4474_v21, %v2174_v11 }
 0x4d2   :  { %v2335_v20 = vadd.f32 %v2303_v15, %v2175_v22  ;;  %v2281_v60 = vpop.permute.xlu0 %2280 }
 0x4d3   :  { %v2307_v51 = vsel %vm2294_vm1, %v2279_v53, %v2281_v60 }
 0x4d4   :  { %v2351_v48 = vmax.f32 %v2335_v20, 0.0  ;;  %v2339_v45 = vadd.f32 %v2307_v51, %v2187_v33 }
 0x4d6   :  { %2367 = vst [vmem:[%s4564_s5 + $0x40] sm:$0xff] %v2351_v48  ;;  %v2355_v23 = vmax.f32 %v2339_v45, 0.0 }
 0x4d8   :  { %2371 = vst [vmem:[%s4564_s5 + $0x60] sm:$0xff] %v2355_v23 }
 0x4da   :  { %v2287_v19 = vpop.permute.xlu0 %2286 }
 0x4db   :  { %v2309_v17 = vsel %vm2294_vm1, %v2287_v19, %v2289_v10 }
 0x4e0   :  { %v2177_v56 = vpop.f32.mrf.mxu2 }
 0x4e1   :  { %v2178_v37 = vadd.f32 %v4474_v21, %v2177_v56 }
 0x4e2   :  { %v2293_v41 = vpop.permute.xlu0 %2292 }
 0x4e3   :  { %v2336_v31 = vadd.f32 %v2304_v4, %v2178_v37  ;;  %v2310_v30 = vsel %vm2294_vm1, %v2291_v13, %v2293_v41 }
 0x4e5   :  { %v2352_v3 = vmax.f32 %v2336_v31, 0.0 }
 0x4e7   :  { %2368 = vst [vmem:[%s4564_s5 + $0x48] sm:$0xff] %v2352_v3  ;;  %v2189_v61 = vpop.f32.mrf.mxu3 }
 0x4e8   :  { %v2190_v28 = vadd.f32 %v4474_v21, %v2189_v61 }
 0x4ea   :  { %v2340_v9 = vadd.f32 %v2308_v1, %v2190_v28 }
 0x4ec   :  { %v2356_v40 = vmax.f32 %v2340_v9, 0.0 }
 0x4ee   :  { %2372 = vst [vmem:[%s4564_s5 + $0x68] sm:$0xff] %v2356_v40 }
 0x4f1   :  { %v2180_v50 = vpop.f32.mrf.mxu2 }
 0x4f2   :  { %v2181_v55 = vadd.f32 %v4474_v21, %v2180_v50 }
 0x4f4   :  { %v2337_v35 = vadd.f32 %v2305_v29, %v2181_v55 }
 0x4f6   :  { %v2353_v32 = vmax.f32 %v2337_v35, 0.0 }
 0x4f8   :  { %2369 = vst [vmem:[%s4564_s5 + $0x50] sm:$0xff] %v2353_v32  ;;  %v2192_v5 = vpop.f32.mrf.mxu3 }
 0x4f9   :  { %v2193_v59 = vadd.f32 %v4474_v21, %v2192_v5 }
 0x4fb   :  { %v2341_v12 = vadd.f32 %v2309_v17, %v2193_v59 }
 0x4fd   :  { %v2357_v46 = vmax.f32 %v2341_v12, 0.0 }
 0x4ff   :  { %2373 = vst [vmem:[%s4564_s5 + $0x70] sm:$0xff] %v2357_v46 }
 0x509   :  { %v2195_v0 = vpop.f32.mrf.mxu3 }
 0x50a   :  { %v2196_v7 = vadd.f32 %v4474_v21, %v2195_v0 }
 0x50c   :  { %v2342_v24 = vadd.f32 %v2310_v30, %v2196_v7 }
 0x50e   :  { %v2358_v47 = vmax.f32 %v2342_v24, 0.0 }
 0x50f   :  { %v2183_v39 = vpop.f32.mrf.mxu2 }
 0x510   :  { %2374 = vst [vmem:[%s4564_s5 + $0x78] sm:$0xff] %v2358_v47  ;;  %v2184_v43 = vadd.f32 %v4474_v21, %v2183_v39 }
 0x512   :  { %v2338_v49 = vadd.f32 %v2306_v52, %v2184_v43 }
 0x514   :  { %v2354_v25 = vmax.f32 %v2338_v49, 0.0 }
 0x516   :  { %2370 = vst [vmem:[%s4564_s5 + $0x58] sm:$0xff] %v2354_v25 }

</bundles_post_ra>
